<compile_context>
chip_gen: v5e
topology: v5e:2x2
jax: 0.10.0
libtpu: 0.0.40
codegen_flags: <defaults>
</compile_context>

<pallas_src>
import jax
import jax.numpy as jnp
from jax.experimental import pallas as pl
from jax.experimental.pallas import tpu as pltpu

# ----------------------------- configuration ------------------------------
B_TOTAL = 256          # sub-graphs per call (review: >= 256)
NODES = 8              # nodes per sub-graph (contiguous per graph)
BT = 64                # sub-graphs per grid tile
TILES = B_TOTAL // BT
assert B_TOTAL % BT == 0

NUM_GCN_LAYERS = 2
EMB_DIM = 32
FEAT_DIM = 32
TRAIN_RELS = 8
NUM_DRUGS = 16

R = (1 + NUM_GCN_LAYERS) * EMB_DIM          # per-node 'repr' width (= 96)
RP = 128                                    # repr width lane-padded to 128
OUT_PAD = 128                               # lane-dense padded output width

# packed MLP buffer layout (rows, all offsets multiples of 16 for bf16 packing)
D1_ROW = 0                                  # rows [0, NUM_DRUGS): drugfeat @ w1
B1_ROW = ((NUM_DRUGS + 15) // 16) * 16      # 16      : b1
W2_ROW = B1_ROW + 16                        # 32..63  : w2 (EMB_DIM, EMB_DIM)
B2_ROW = W2_ROW + ((EMB_DIM + 15) // 16) * 16   # 64  : b2
MLP_ROWS = B2_ROW + 16                      # 80

# packed fc buffer layout (rows)
FC_G_ROW = 0                                # g_out block   rows [0, 96)  (pad to 128)
FC_H_ROW = RP                               # head block    rows [128, 224)
FC_T_ROW = 2 * RP                           # tail block    rows [256, 352)
FC_F1_ROW = 3 * RP                          # fuse1 block   rows [384, 416)
FC_F2_ROW = 3 * RP + EMB_DIM                # fuse2 block   rows [416, 448)
FC_BIAS_ROW = 3 * RP + 2 * EMB_DIM          # bias          row 448
FC_ROWS = FC_BIAS_ROW + 16                  # 464


# ------------------------------ Pallas kernel ------------------------------
def graph_classifier_kernel(
    x_ref,     # (BT*NODES, RP)      bf16  flat node 'repr', lane-padded
    sel_ref,   # (3*BT, BT*NODES)    bf16  [mean mask ; head 1-hot ; tail 1-hot]
    oh_ref,    # (2*BT, NUM_DRUGS)   bf16  [head drug 1-hot ; tail drug 1-hot]
    mlp_ref,   # (MLP_ROWS, EMB_DIM) bf16  packed D1/b1/w2/b2
    fc_ref,    # (FC_ROWS, OUT_PAD)  bf16  packed fc weight blocks + bias row
    out_ref,   # (BT, OUT_PAD)       f32
):
    # ---- [g_out ; head ; tail] for this tile in ONE MXU dot -----------------
    t = jnp.dot(sel_ref[...], x_ref[...],
                preferred_element_type=jnp.float32)            # (3*BT, RP) f32
    t = t.astype(jnp.bfloat16)

    # ---- drug-feature MLP: mp_layer2(relu(mp_layer1(feat))), eval dropout ---
    # (w1 folded host-side: D1 = drugfeat @ w1, so mp_layer1(feat) = one_hot @ D1 + b1)
    d1 = mlp_ref[D1_ROW:D1_ROW + NUM_DRUGS, :]                  # (ND, EMB)
    b1 = mlp_ref[B1_ROW:B1_ROW + 1, :]                          # (1, EMB)
    w2 = mlp_ref[W2_ROW:W2_ROW + EMB_DIM, :]                    # (EMB, EMB)
    b2 = mlp_ref[B2_ROW:B2_ROW + 1, :]                          # (1, EMB)

    h = jnp.dot(oh_ref[...], d1, preferred_element_type=jnp.float32)
    h = jnp.maximum(h + b1.astype(jnp.float32), 0.0).astype(jnp.bfloat16)
    fuse = jnp.dot(h, w2, preferred_element_type=jnp.float32)   # (2*BT, EMB)
    fuse = (fuse + b2.astype(jnp.float32)).astype(jnp.bfloat16)

    # ---- fc_layer(cat([g_out, head, tail, fuse1, fuse2])) as accumulated
    #      row-slice dots at 128/16-aligned offsets (M = BT per dot) ----------
    out = jnp.dot(t[0:BT], fc_ref[FC_G_ROW:FC_G_ROW + RP, :],
                  preferred_element_type=jnp.float32)
    out += jnp.dot(t[BT:2 * BT], fc_ref[FC_H_ROW:FC_H_ROW + RP, :],
                   preferred_element_type=jnp.float32)
    out += jnp.dot(t[2 * BT:3 * BT], fc_ref[FC_T_ROW:FC_T_ROW + RP, :],
                   preferred_element_type=jnp.float32)
    out += jnp.dot(fuse[0:BT], fc_ref[FC_F1_ROW:FC_F1_ROW + EMB_DIM, :],
                   preferred_element_type=jnp.float32)
    out += jnp.dot(fuse[BT:2 * BT], fc_ref[FC_F2_ROW:FC_F2_ROW + EMB_DIM, :],
                   preferred_element_type=jnp.float32)
    out += fc_ref[FC_BIAS_ROW:FC_BIAS_ROW + 1, :].astype(jnp.float32)

    out_ref[...] = out                                          # lane-dense store


# ------------------------------ host wrapper -------------------------------
def pack_params(params, drugfeat):
    """Pack / pre-fold the small per-layer weights once, in f32, cast to bf16."""
    d1 = drugfeat @ params["w1"]                                # fold mp_layer1 weight
    mlp = jnp.zeros((MLP_ROWS, EMB_DIM), jnp.float32)
    mlp = mlp.at[D1_ROW:D1_ROW + NUM_DRUGS, :].set(d1)
    mlp = mlp.at[B1_ROW:B1_ROW + 1, :].set(params["b1"])
    mlp = mlp.at[W2_ROW:W2_ROW + EMB_DIM, :].set(params["w2"])
    mlp = mlp.at[B2_ROW:B2_ROW + 1, :].set(params["b2"])

    wfc = params["wfc"]                                         # (352, TRAIN_RELS)
    fc = jnp.zeros((FC_ROWS, OUT_PAD), jnp.float32)
    fc = fc.at[FC_G_ROW:FC_G_ROW + R, :TRAIN_RELS].set(wfc[0:R])
    fc = fc.at[FC_H_ROW:FC_H_ROW + R, :TRAIN_RELS].set(wfc[R:2 * R])
    fc = fc.at[FC_T_ROW:FC_T_ROW + R, :TRAIN_RELS].set(wfc[2 * R:3 * R])
    fc = fc.at[FC_F1_ROW:FC_F1_ROW + EMB_DIM, :TRAIN_RELS].set(wfc[3 * R:3 * R + EMB_DIM])
    fc = fc.at[FC_F2_ROW:FC_F2_ROW + EMB_DIM, :TRAIN_RELS].set(
        wfc[3 * R + EMB_DIM:3 * R + 2 * EMB_DIM])
    fc = fc.at[FC_BIAS_ROW:FC_BIAS_ROW + 1, :TRAIN_RELS].set(params["bfc"])
    return mlp.astype(jnp.bfloat16), fc.astype(jnp.bfloat16)


_FLOPS = TILES * (
    2 * (3 * BT) * (BT * NODES) * RP            # selection dot
    + 2 * (2 * BT) * NUM_DRUGS * EMB_DIM        # one_hot @ D1
    + 2 * (2 * BT) * EMB_DIM * EMB_DIM          # @ w2
    + 2 * BT * (3 * RP + 2 * EMB_DIM) * OUT_PAD # fc dots
)
_BYTES = (B_TOTAL * NODES * RP * 2
          + TILES * 3 * BT * BT * NODES * 2
          + TILES * 2 * BT * NUM_DRUGS * 2
          + MLP_ROWS * EMB_DIM * 2
          + FC_ROWS * OUT_PAD * 2
          + B_TOTAL * OUT_PAD * 4)


@jax.jit
def graph_classifier_forward(node_repr, node_id, node_idx, mlp_packed, fc_packed):
    # ---- build the per-tile selection / one-hot operands (cheap, once/call) ----
    ids2d = node_id.reshape(B_TOTAL, NODES)
    idx2d = node_idx.reshape(B_TOTAL, NODES)
    head_pos = jnp.argmax(ids2d == 1, axis=1)                   # first id==1 node
    tail_pos = jnp.argmax(ids2d == 2, axis=1)                   # first id==2 node

    n_iota = jnp.arange(NODES)
    head_oh = (n_iota[None, :] == head_pos[:, None]).astype(jnp.float32)
    tail_oh = (n_iota[None, :] == tail_pos[:, None]).astype(jnp.float32)
    mean_w = jnp.full((B_TOTAL, NODES), 1.0 / NODES, jnp.float32)
    w3 = jnp.stack([mean_w, head_oh, tail_oh], axis=0)          # (3, B, N)
    w3t = w3.reshape(3, TILES, BT, NODES).transpose(1, 0, 2, 3) # (T, 3, BT, N)
    eye_bt = jnp.eye(BT, dtype=jnp.float32)
    sel = eye_bt[None, None, :, :, None] * w3t[:, :, None, :, :]   # (T,3,BT,BT,N)
    sel = sel.reshape(TILES * 3 * BT, BT * NODES).astype(jnp.bfloat16)

    head_drug = jnp.take_along_axis(idx2d, head_pos[:, None], axis=1)[:, 0]
    tail_drug = jnp.take_along_axis(idx2d, tail_pos[:, None], axis=1)[:, 0]
    drugs = jnp.stack([head_drug.reshape(TILES, BT),
                       tail_drug.reshape(TILES, BT)], axis=1)   # (T, 2, BT)
    oh = jax.nn.one_hot(drugs, NUM_DRUGS, dtype=jnp.float32)
    oh = oh.reshape(TILES * 2 * BT, NUM_DRUGS).astype(jnp.bfloat16)

    x = jnp.pad(node_repr, ((0, 0), (0, RP - R))).astype(jnp.bfloat16)  # (B*N, 128)

    out_padded = pl.pallas_call(
        graph_classifier_kernel,
        out_shape=jax.ShapeDtypeStruct((B_TOTAL, OUT_PAD), jnp.float32),
        grid=(TILES,),
        in_specs=[
            pl.BlockSpec((BT * NODES, RP), lambda i: (i, 0)),
            pl.BlockSpec((3 * BT, BT * NODES), lambda i: (i, 0)),
            pl.BlockSpec((2 * BT, NUM_DRUGS), lambda i: (i, 0)),
            pl.BlockSpec((MLP_ROWS, EMB_DIM), lambda i: (0, 0)),   # fetched once
            pl.BlockSpec((FC_ROWS, OUT_PAD), lambda i: (0, 0)),    # fetched once
        ],
        out_specs=pl.BlockSpec((BT, OUT_PAD), lambda i: (i, 0)),
        compiler_params=pltpu.CompilerParams(
            dimension_semantics=("parallel",),
            vmem_limit_bytes=32 * 1024 * 1024,
        ),
        cost_estimate=pl.CostEstimate(flops=_FLOPS, transcendentals=0,
                                      bytes_accessed=_BYTES),
    )(x, sel, oh, mlp_packed, fc_packed)

    return out_padded[:, :TRAIN_RELS]


# -------------------------- pure-JAX reference -----------------------------
def reference_forward(node_repr, node_id, node_idx, drugfeat, params):
    ids2d = node_id.reshape(B_TOTAL, NODES)
    head_pos = jnp.argmax(ids2d == 1, axis=1)
    tail_pos = jnp.argmax(ids2d == 2, axis=1)
    base = jnp.arange(B_TOTAL) * NODES
    head_ids = base + head_pos
    tail_ids = base + tail_pos

    g_out = node_repr.reshape(B_TOTAL, NODES, R).mean(axis=1)
    head_embs = node_repr[head_ids]
    tail_embs = node_repr[tail_ids]
    head_feat = drugfeat[node_idx[head_ids]]
    tail_feat = drugfeat[node_idx[tail_ids]]

    def mlp(x):
        h = jnp.maximum(x @ params["w1"] + params["b1"], 0.0)
        return h @ params["w2"] + params["b2"]

    g_rep = jnp.concatenate(
        [g_out, head_embs, tail_embs, mlp(head_feat), mlp(tail_feat)], axis=1)
    return g_rep @ params["wfc"] + params["bfc"]


# --------------------------------- main ------------------------------------
if __name__ == "__main__":
    key = jax.random.PRNGKey(0)
    keys = jax.random.split(key, 10)

    n_total = B_TOTAL * NODES
    node_repr = jax.random.normal(keys[0], (n_total, R), dtype=jnp.float32)

    # One head (id==1) at local position 0, one tail (id==2) at position 1 of
    # every sub-graph (the module assumes exactly one of each per graph).
    node_id = jnp.zeros((B_TOTAL, NODES), dtype=jnp.int32)
    node_id = node_id.at[:, 0].set(1).at[:, 1].set(2).reshape(-1)
    node_idx = jax.random.randint(keys[1], (n_total,), 0, NUM_DRUGS, dtype=jnp.int32)
    drugfeat = jax.random.normal(keys[2], (NUM_DRUGS, FEAT_DIM), dtype=jnp.float32)

    def init_linear(k, fan_in, fan_out):
        kw, kb = jax.random.split(k)
        bound = 1.0 / jnp.sqrt(fan_in)
        w = jax.random.uniform(kw, (fan_in, fan_out), jnp.float32, -bound, bound)
        b = jax.random.uniform(kb, (1, fan_out), jnp.float32, -bound, bound)
        return w, b

    G_REP_DIM = 3 * R + 2 * EMB_DIM                        # 352
    w1, b1 = init_linear(keys[3], FEAT_DIM, EMB_DIM)       # mp_layer1
    w2, b2 = init_linear(keys[4], EMB_DIM, EMB_DIM)        # mp_layer2
    wfc, bfc = init_linear(keys[5], G_REP_DIM, TRAIN_RELS) # fc_layer

    params = {"w1": w1, "b1": b1, "w2": w2, "b2": b2, "wfc": wfc, "bfc": bfc}
    mlp_packed, fc_packed = pack_params(params, drugfeat)  # pack once, outside jit

    out = graph_classifier_forward(node_repr, node_id, node_idx,
                                   mlp_packed, fc_packed)
    out = jax.block_until_ready(out)

    ref = reference_forward(node_repr, node_id, node_idx, drugfeat, params)
    assert out.shape == (B_TOTAL, TRAIN_RELS)
    # bf16 MXU operands -> relaxed tolerance vs. the f32 reference.
    assert jnp.allclose(out, ref, atol=2e-2, rtol=2e-2), "mismatch vs reference"

    print("KERNEL_OK")
</pallas_src>

<mosaic_0001>
module attributes {stable_mosaic.version = 11 : i64} {
  func.func @graph_classifier_kernel(%arg0: i32, %arg1: memref<512x128xbf16, #tpu.memory_space<vmem>>, %arg2: memref<192x512xbf16, #tpu.memory_space<vmem>>, %arg3: memref<128x16xbf16, #tpu.memory_space<vmem>>, %arg4: memref<80x32xbf16, #tpu.memory_space<vmem>>, %arg5: memref<464x128xbf16, #tpu.memory_space<vmem>>, %arg6: memref<64x128xf32, #tpu.memory_space<vmem>>) attributes {dimension_semantics = [#tpu.dimension_semantics<parallel>], iteration_bounds = array<i64: 4>, scalar_prefetch = 0 : i64, scratch_operands = 0 : i64, tpu.core_type = #tpu.core_type<tc>, window_params = [{transform_indices = @transform_0, window_bounds = array<i64: 512, 128>}, {transform_indices = @transform_1, window_bounds = array<i64: 192, 512>}, {transform_indices = @transform_2, window_bounds = array<i64: 128, 16>}, {pipeline_mode = #tpu.pipeline_mode<synchronous>, transform_indices = @transform_3, window_bounds = array<i64: 80, 32>}, {pipeline_mode = #tpu.pipeline_mode<synchronous>, transform_indices = @transform_4, window_bounds = array<i64: 464, 128>}, {transform_indices = @transform_5, window_bounds = array<i64: 64, 128>}]} {
    %c0 = arith.constant 0 : index
    %c0_0 = arith.constant 0 : index
    %0 = vector.load %arg2[%c0, %c0_0] : memref<192x512xbf16, #tpu.memory_space<vmem>>, vector<192x512xbf16>
    %c0_1 = arith.constant 0 : index
    %c0_2 = arith.constant 0 : index
    %1 = vector.load %arg1[%c0_1, %c0_2] : memref<512x128xbf16, #tpu.memory_space<vmem>>, vector<512x128xbf16>
    %cst = arith.constant dense<0.000000e+00> : vector<192x128xf32>
    %2 = tpu.matmul %0, %1, %cst {dimension_numbers = #tpu.dot_dimension_numbers<[1], [0], [0], [1], [0, 0, 1, 1], [], []>} : vector<192x512xbf16>, vector<512x128xbf16>, vector<192x128xf32> -> vector<192x128xf32>
    %3 = arith.truncf %2 : vector<192x128xf32> to vector<192x128xbf16>
    %c0_3 = arith.constant 0 : index
    %c0_4 = arith.constant 0 : index
    %4 = vector.load %arg4[%c0_3, %c0_4] : memref<80x32xbf16, #tpu.memory_space<vmem>>, vector<16x32xbf16>
    %c16 = arith.constant 16 : index
    %c0_5 = arith.constant 0 : index
    %5 = vector.load %arg4[%c16, %c0_5] : memref<80x32xbf16, #tpu.memory_space<vmem>>, vector<1x32xbf16>
    %c32 = arith.constant 32 : index
    %c0_6 = arith.constant 0 : index
    %6 = vector.load %arg4[%c32, %c0_6] : memref<80x32xbf16, #tpu.memory_space<vmem>>, vector<32x32xbf16>
    %c64 = arith.constant 64 : index
    %c0_7 = arith.constant 0 : index
    %7 = vector.load %arg4[%c64, %c0_7] : memref<80x32xbf16, #tpu.memory_space<vmem>>, vector<1x32xbf16>
    %c0_8 = arith.constant 0 : index
    %c0_9 = arith.constant 0 : index
    %8 = vector.load %arg3[%c0_8, %c0_9] : memref<128x16xbf16, #tpu.memory_space<vmem>>, vector<128x16xbf16>
    %cst_10 = arith.constant dense<0.000000e+00> : vector<128x32xf32>
    %9 = tpu.matmul %8, %4, %cst_10 {dimension_numbers = #tpu.dot_dimension_numbers<[1], [0], [0], [1], [0, 0, 1, 1], [], []>} : vector<128x16xbf16>, vector<16x32xbf16>, vector<128x32xf32> -> vector<128x32xf32>
    %10 = arith.extf %5 : vector<1x32xbf16> to vector<1x32xf32>
    %11 = vector.broadcast %10 : vector<1x32xf32> to vector<128x32xf32>
    %12 = arith.addf %9, %11 : vector<128x32xf32>
    %cst_11 = arith.constant 0.000000e+00 : f32
    %13 = vector.broadcast %cst_11 : f32 to vector<128x32xf32>
    %14 = arith.maximumf %12, %13 : vector<128x32xf32>
    %15 = arith.truncf %14 : vector<128x32xf32> to vector<128x32xbf16>
    %cst_12 = arith.constant dense<0.000000e+00> : vector<128x32xf32>
    %16 = tpu.matmul %15, %6, %cst_12 {dimension_numbers = #tpu.dot_dimension_numbers<[1], [0], [0], [1], [0, 0, 1, 1], [], []>} : vector<128x32xbf16>, vector<32x32xbf16>, vector<128x32xf32> -> vector<128x32xf32>
    %17 = arith.extf %7 : vector<1x32xbf16> to vector<1x32xf32>
    %18 = vector.broadcast %17 : vector<1x32xf32> to vector<128x32xf32>
    %19 = arith.addf %16, %18 : vector<128x32xf32>
    %20 = arith.truncf %19 : vector<128x32xf32> to vector<128x32xbf16>
    %21 = vector.extract_strided_slice %3 {offsets = [0, 0], sizes = [64, 128], strides = [1, 1]} : vector<192x128xbf16> to vector<64x128xbf16>
    %c0_13 = arith.constant 0 : index
    %c0_14 = arith.constant 0 : index
    %22 = vector.load %arg5[%c0_13, %c0_14] : memref<464x128xbf16, #tpu.memory_space<vmem>>, vector<128x128xbf16>
    %cst_15 = arith.constant dense<0.000000e+00> : vector<64x128xf32>
    %23 = tpu.matmul %21, %22, %cst_15 {dimension_numbers = #tpu.dot_dimension_numbers<[1], [0], [0], [1], [0, 0, 1, 1], [], []>} : vector<64x128xbf16>, vector<128x128xbf16>, vector<64x128xf32> -> vector<64x128xf32>
    %24 = vector.extract_strided_slice %3 {offsets = [64, 0], sizes = [64, 128], strides = [1, 1]} : vector<192x128xbf16> to vector<64x128xbf16>
    %c128 = arith.constant 128 : index
    %c0_16 = arith.constant 0 : index
    %25 = vector.load %arg5[%c128, %c0_16] : memref<464x128xbf16, #tpu.memory_space<vmem>>, vector<128x128xbf16>
    %cst_17 = arith.constant dense<0.000000e+00> : vector<64x128xf32>
    %26 = tpu.matmul %24, %25, %cst_17 {dimension_numbers = #tpu.dot_dimension_numbers<[1], [0], [0], [1], [0, 0, 1, 1], [], []>} : vector<64x128xbf16>, vector<128x128xbf16>, vector<64x128xf32> -> vector<64x128xf32>
    %27 = arith.addf %23, %26 : vector<64x128xf32>
    %28 = vector.extract_strided_slice %3 {offsets = [128, 0], sizes = [64, 128], strides = [1, 1]} : vector<192x128xbf16> to vector<64x128xbf16>
    %c256 = arith.constant 256 : index
    %c0_18 = arith.constant 0 : index
    %29 = vector.load %arg5[%c256, %c0_18] : memref<464x128xbf16, #tpu.memory_space<vmem>>, vector<128x128xbf16>
    %cst_19 = arith.constant dense<0.000000e+00> : vector<64x128xf32>
    %30 = tpu.matmul %28, %29, %cst_19 {dimension_numbers = #tpu.dot_dimension_numbers<[1], [0], [0], [1], [0, 0, 1, 1], [], []>} : vector<64x128xbf16>, vector<128x128xbf16>, vector<64x128xf32> -> vector<64x128xf32>
    %31 = arith.addf %27, %30 : vector<64x128xf32>
    %32 = vector.extract_strided_slice %20 {offsets = [0, 0], sizes = [64, 32], strides = [1, 1]} : vector<128x32xbf16> to vector<64x32xbf16>
    %c384 = arith.constant 384 : index
    %c0_20 = arith.constant 0 : index
    %33 = vector.load %arg5[%c384, %c0_20] : memref<464x128xbf16, #tpu.memory_space<vmem>>, vector<32x128xbf16>
    %cst_21 = arith.constant dense<0.000000e+00> : vector<64x128xf32>
    %34 = tpu.matmul %32, %33, %cst_21 {dimension_numbers = #tpu.dot_dimension_numbers<[1], [0], [0], [1], [0, 0, 1, 1], [], []>} : vector<64x32xbf16>, vector<32x128xbf16>, vector<64x128xf32> -> vector<64x128xf32>
    %35 = arith.addf %31, %34 : vector<64x128xf32>
    %36 = vector.extract_strided_slice %20 {offsets = [64, 0], sizes = [64, 32], strides = [1, 1]} : vector<128x32xbf16> to vector<64x32xbf16>
    %c416 = arith.constant 416 : index
    %c0_22 = arith.constant 0 : index
    %37 = vector.load %arg5[%c416, %c0_22] : memref<464x128xbf16, #tpu.memory_space<vmem>>, vector<32x128xbf16>
    %cst_23 = arith.constant dense<0.000000e+00> : vector<64x128xf32>
    %38 = tpu.matmul %36, %37, %cst_23 {dimension_numbers = #tpu.dot_dimension_numbers<[1], [0], [0], [1], [0, 0, 1, 1], [], []>} : vector<64x32xbf16>, vector<32x128xbf16>, vector<64x128xf32> -> vector<64x128xf32>
    %39 = arith.addf %35, %38 : vector<64x128xf32>
    %c448 = arith.constant 448 : index
    %c0_24 = arith.constant 0 : index
    %40 = vector.load %arg5[%c448, %c0_24] : memref<464x128xbf16, #tpu.memory_space<vmem>>, vector<1x128xbf16>
    %41 = arith.extf %40 : vector<1x128xbf16> to vector<1x128xf32>
    %42 = vector.broadcast %41 : vector<1x128xf32> to vector<64x128xf32>
    %43 = arith.addf %39, %42 : vector<64x128xf32>
    %c0_25 = arith.constant 0 : index
    %c0_26 = arith.constant 0 : index
    %44 = vector.load %arg6[%c0_25, %c0_26] : memref<64x128xf32, #tpu.memory_space<vmem>>, vector<64x128xf32>
    tpu.vector_store %arg6[%c0_25, %c0_26], %43 {strides = array<i32>} : memref<64x128xf32, #tpu.memory_space<vmem>>, vector<64x128xf32>,
    return
  }
  func.func @transform_0(%arg0: i32) -> (i32, i32) {
    %c0_i32 = arith.constant 0 : i32
    %c0_i32_0 = arith.constant 0 : i32
    return %arg0, %c0_i32 : i32, i32
  }
  func.func @transform_1(%arg0: i32) -> (i32, i32) {
    %c0_i32 = arith.constant 0 : i32
    %c0_i32_0 = arith.constant 0 : i32
    return %arg0, %c0_i32 : i32, i32
  }
  func.func @transform_2(%arg0: i32) -> (i32, i32) {
    %c0_i32 = arith.constant 0 : i32
    %c0_i32_0 = arith.constant 0 : i32
    return %arg0, %c0_i32 : i32, i32
  }
  func.func @transform_3(%arg0: i32) -> (i32, i32) {
    %c0_i32 = arith.constant 0 : i32
    %c0_i32_0 = arith.constant 0 : i32
    %c0_i32_1 = arith.constant 0 : i32
    return %c0_i32, %c0_i32_0 : i32, i32
  }
  func.func @transform_4(%arg0: i32) -> (i32, i32) {
    %c0_i32 = arith.constant 0 : i32
    %c0_i32_0 = arith.constant 0 : i32
    %c0_i32_1 = arith.constant 0 : i32
    return %c0_i32, %c0_i32_0 : i32, i32
  }
  func.func @transform_5(%arg0: i32) -> (i32, i32) {
    %c0_i32 = arith.constant 0 : i32
    %c0_i32_0 = arith.constant 0 : i32
    return %arg0, %c0_i32 : i32, i32
  }
}

</mosaic_0001>

<bundles_post_ra>
// kernel: squeeze.2
= control target key start
LH: loop header
LB: loop body
LE: loop exit
PB: predicated region body
PF: predicated region fallthrough
CT: control target
= control target key end

     0   :  { %vm7_vm0 = vcmask 523264   ;;  %s39_s0 = inlined_call_operand.vmem [shape: s32[256], index: 0, kind: input, shape index: {}]   ;;  %s40_s1 = inlined_call_operand.vmem [shape: s32[4,1,64], index: 1, kind: output, shape index: {}]  }
   0x1   :  { %v4_v0 = vld [vmem:[%s39_s0] sm:$0x3]  ;;  %s22_s0 = smov 64  }
   0x2   :  { %5 = vst [vmem:[#allocation1] sm:$0x3] %v4_v0 }
   0x9   :  { %v9_v1 = vld [vmem:[#allocation1] sm:$0x3]  }
   0xa   :  { %v6_v2 = vld [vmem:[#allocation1] sm:$0x3]   ;;  %10 = vrot.lane.b32.xlu0 %v9_v1, %s22_s0 }
   0xb   :  { %8 = vst.msk [vmem:[#allocation0] ss:$2 sm:$0x3] %vm7_vm0, %v6_v2  }
  0x7c   :  { %v11_v3 = vpop.permute.xlu0 %10  }
  0x7d   :  { %14 = vst.msk [vmem:[#allocation0 + $0x1] ss:$2 sm:$0x3] %vm7_vm0, %v11_v3  }
  0x84   :  { %v17_v4 = vld [vmem:[#allocation0] sm:$0xf] }
  0x85   :  { %20 = vst [vmem:[%s40_s1] sm:$0xf] %v17_v4 }

// kernel: graph_classifier_forward.1
= control target key start
LH: loop header
LB: loop body
LE: loop exit
PB: predicated region body
PF: predicated region fallthrough
CT: control target
= control target key end

     0   :  { %s2719_s18 = smov 0   ;;  %s3168_s0 = inlined_call_operand.vmem [shape: bf16[2048,128], index: 0, kind: input, shape index: {}]   ;;  %s3169_s1 = inlined_call_operand.vmem [shape: bf16[768,512], index: 1, kind: input, shape index: {}]   ;;  %s3170_s2 = inlined_call_operand.vmem [shape: bf16[512,16], index: 2, kind: input, shape index: {}]   ;;  %s3171_s3 = inlined_call_operand.vmem [shape: bf16[80,32], index: 3, kind: input, shape index: {}]   ;;  %s3172_s4 = inlined_call_operand.vmem [shape: bf16[464,128], index: 4, kind: input, shape index: {}]   ;;  %s3173_s5 = inlined_call_operand.vmem [shape: f32[256,128], index: 5, kind: output, shape index: {}]  }
   0x1 LB: > { %s2725_s19 = sadd.s32 4294967295, %s2687_s18   ;;  %p2026_p0 = scmp.ge.s32.totalorder %s2687_s18, 1  ;;  %s2687_s18 = sphi %s2719_s18, %s15_s18  }
   0x2   : > { %p211_p1 = scmp.lt.s32.totalorder %s2687_s18, 5 }
   0x4   : > { %p212_p2 = pnand %p2026_p0, %p211_p1 }
   0x5   : > { %s2027_s20 = sshll.u32 (!%p212_p2), %s2725_s19, 6  ;;  %s256_s25 = smul.u32 (!%p212_p2), 24, %s2725_s19 }
   0x6   : > { %215 = sbr.rel (%p212_p2) target bundleno = 723 (0x2d3), region = 40  ;;  %p251_p3 = scmp.lt.s32.totalorder (!%p212_p2), %s2027_s20, 255 }
   0x7   : > { %p257_p4 = scmp.lt.s32.totalorder (!%p212_p2), %s256_s25, 95  ;;  %s2031_s9 = sshll.u32 (!%p212_p2), %s2725_s19, 4 }
   0x8   : > { %p264_p5 = scmp.lt.s32.totalorder (!%p212_p2), %s2031_s9, 63 }
   0xb   : > { %s3175_s20 = smov (!%p251_p3, %s2027_s20), 255  ;;  %s3177_s25 = smov (!%p257_p4, %s256_s25), 95  ;;  %v2618_v23 = vld [vmem:[%s3171_s3] sm:$0xff]  ;;  %vm1192_vm0 = vcmask 130048   ;;  %vm1304_vm1 = vcmask 261120  }
   0xc   : > { %s2028_s21 = sshll.u32 %s3175_s20, 2  ;;  %s2537_s26 = sshll.u32 %s3177_s25, 4 }
   0xd   : > { %s2733_s24 = scalar_lea.vmem %s3168_s0, %s2028_s21  ;;  %s2752_s29 = scalar_lea.vmem %s3169_s1, %s2537_s26 }
   0xe   : > { %v2593_v0 = vld [vmem:[%s2733_s24 + $0x38] sm:$0xff]  ;;  %v2592_v2 = vld [vmem:[%s2733_s24 + $0x30] sm:$0xff]  ;;  %v2591_v4 = vld [vmem:[%s2733_s24 + $0x28] sm:$0xff]  ;;  %s3179_s9 = smov (!%p264_p5, %s2031_s9), 63 }
   0xf   : > { %v2617_v1 = vld [vmem:[%s2733_s24 + $0xf8] sm:$0xff]  ;;  %820 = vmatpush.bf16.msra.mxu0 %v2593_v0  ;;  %2657 = vmatpush.bf16.msra.mxu1 %v2593_v0  ;;  %v2616_v3 = vld [vmem:[%s2733_s24 + $0xf0] sm:$0xff]  ;;  %v2615_v5 = vld [vmem:[%s2733_s24 + $0xe8] sm:$0xff]  ;;  %s2032_s14 = sshll.u32 %s3179_s9, 2  ;;  %s2033_s9 = sshll.u32 %s2725_s19, 3 }
  0x10   : > { %2658 = vmatpush.bf16.msra.mxu2 %v2593_v0  ;;  %1027 = vmatpush.bf16.msra.mxu3 %v2617_v1  ;;  %v2590_v6 = vld [vmem:[%s2733_s24 + $0x20] sm:$0xff]  ;;  %v2589_v8 = vld [vmem:[%s2733_s24 + $0x18] sm:$0xff]  ;;  %v2588_v10 = vld [vmem:[%s2733_s24 + $0x10] sm:$0xff]  ;;  %s2876_s21 = scalar_lea.vmem %s3170_s2, %s2032_s14  ;;  %p270_p6 = scmp.lt.s32.totalorder %s2033_s9, 31 }
  0x11   : > { %v2614_v7 = vld [vmem:[%s2733_s24 + $0xe0] sm:$0xff]  ;;  %v2613_v9 = vld [vmem:[%s2733_s24 + $0xd8] sm:$0xff]  ;;  %v2612_v11 = vld [vmem:[%s2733_s24 + $0xd0] sm:$0xff] }
  0x12   : > { %v2587_v12 = vld [vmem:[%s2733_s24 + $0x8] sm:$0xff]  ;;  %v2586_v14 = vld [vmem:[%s2733_s24] sm:$0xff]  ;;  %v2540_v17 = vld [vmem:[%s2752_s29 + $0xc] sm:$0xf0]  ;;  %s3181_s9 = smov (!%p270_p6, %s2033_s9), 31 }
  0x13   : > { %821 = vmatpush.bf16.msra.mxu0 %v2592_v2  ;;  %2659 = vmatpush.bf16.msra.mxu1 %v2592_v2  ;;  %v2611_v13 = vld [vmem:[%s2733_s24 + $0xc8] sm:$0xff]  ;;  %v2610_v15 = vld [vmem:[%s2733_s24 + $0xc0] sm:$0xff]  ;;  %v2576_v19 = vld [vmem:[%s2752_s29 + $0x12c] sm:$0xf0] }
  0x14   : > { %2660 = vmatpush.bf16.msra.mxu2 %v2592_v2  ;;  %1028 = vmatpush.bf16.msra.mxu3 %v2616_v3  ;;  %v2037_v16 = vld [vmem:[%s2752_s29] sm:$0xf]  ;;  %v2609_v20 = vld [vmem:[%s2733_s24 + $0xb8] sm:$0xff]  ;;  %v2539_v21 = vld [vmem:[%s2752_s29 + $0xc] sm:$0xf] }
  0x15   : > { %v2181_v18 = vld [vmem:[%s2752_s29 + $0x120] sm:$0xf]  ;;  %v2047_v22 = vld [vmem:[%s2752_s29 + $0x18] sm:$0xf0]  ;;  %v2584_v25 = vld [vmem:[%s2752_s29 + $0x16c] sm:$0xf0]  ;;  %v2038_v26 = vor.u32 %v2540_v17, %v2037_v16 }
  0x16   : > { %v2213_v24 = vld [vmem:[%s2752_s29 + $0x160] sm:$0xf]  ;;  %v2182_v27 = vor.u32 %v2576_v19, %v2181_v18  ;;  %v2050_v28 = vor.u32 %v2539_v21, %v2047_v22  ;;  %v2601_v29 = vld [vmem:[%s2733_s24 + $0x78] sm:$0xff]  ;;  %v2608_v31 = vld [vmem:[%s2733_s24 + $0xb0] sm:$0xff] }
  0x17   : > { %822 = vmatpush.bf16.msra.mxu0 %v2591_v4  ;;  %2661 = vmatpush.bf16.msra.mxu1 %v2591_v4  ;;  %v2214_v30 = vor.u32 %v2584_v25, %v2213_v24  ;;  %v2600_v32 = vld [vmem:[%s2733_s24 + $0x70] sm:$0xff]  ;;  %v2607_v33 = vld [vmem:[%s2733_s24 + $0xa8] sm:$0xff]  ;;  %v2606_v35 = vld [vmem:[%s2733_s24 + $0xa0] sm:$0xff] }
  0x18   : > { %2662 = vmatpush.bf16.msra.mxu2 %v2591_v4  ;;  %1029 = vmatpush.bf16.msra.mxu3 %v2615_v5  ;;  %v2599_v34 = vld [vmem:[%s2733_s24 + $0x68] sm:$0xff]  ;;  %v2598_v36 = vld [vmem:[%s2733_s24 + $0x60] sm:$0xff]  ;;  %v2544_v38 = vld [vmem:[%s2752_s29 + $0x2c] sm:$0xf0] }
  0x19   : > { %v2053_v37 = vld [vmem:[%s2752_s29 + $0x20] sm:$0xf]  ;;  %v2580_v40 = vld [vmem:[%s2752_s29 + $0x14c] sm:$0xf0]  ;;  %v2543_v41 = vld [vmem:[%s2752_s29 + $0x2c] sm:$0xf] }
  0x1a   : > { %v2197_v39 = vld [vmem:[%s2752_s29 + $0x140] sm:$0xf]  ;;  %v2063_v42 = vld [vmem:[%s2752_s29 + $0x38] sm:$0xf0]  ;;  %v2054_v44 = vor.u32 %v2544_v38, %v2053_v37  ;;  %v2604_v48 = vld [vmem:[%s2733_s24 + $0x90] sm:$0xff] }
  0x1b   : > { %823 = vmatpush.bf16.msra.mxu0 %v2590_v6  ;;  %2663 = vmatpush.bf16.msra.mxu1 %v2590_v6  ;;  %v2605_v43 = vld [vmem:[%s2733_s24 + $0x98] sm:$0xff]  ;;  %v2198_v45 = vor.u32 %v2580_v40, %v2197_v39  ;;  %v2066_v46 = vor.u32 %v2543_v41, %v2063_v42  ;;  %v2596_v49 = vld [vmem:[%s2733_s24 + $0x50] sm:$0xff]  ;;  %v2603_v50 = vld [vmem:[%s2733_s24 + $0x88] sm:$0xff] }
  0x1c   : > { %2664 = vmatpush.bf16.msra.mxu2 %v2590_v6  ;;  %1030 = vmatpush.bf16.msra.mxu3 %v2614_v7  ;;  %v2597_v47 = vld [vmem:[%s2733_s24 + $0x58] sm:$0xff]  ;;  %v2595_v51 = vld [vmem:[%s2733_s24 + $0x48] sm:$0xff]  ;;  %v2602_v52 = vld [vmem:[%s2733_s24 + $0x80] sm:$0xff] }
  0x1d   : > { %v2045_v53 = vld [vmem:[%s2752_s29 + $0x8] sm:$0xf]  ;;  %v2541_v54 = vld [vmem:[%s2752_s29 + $0x14] sm:$0xf0]  ;;  %v2594_v55 = vld [vmem:[%s2733_s24 + $0x40] sm:$0xff] }
  0x1e   : > { %v2069_v56 = vld [vmem:[%s2752_s29 + $0x40] sm:$0xf]  ;;  %v2548_v57 = vld [vmem:[%s2752_s29 + $0x4c] sm:$0xf0]  ;;  %v2538_v58 = vld [vmem:[%s2752_s29 + $0x4] sm:$0xf]  ;;  %v2046_v60 = vor.u32 %v2541_v54, %v2045_v53 }
  0x1f   : > { %824 = vmatpush.bf16.msra.mxu0 %v2589_v8  ;;  %2665 = vmatpush.bf16.msra.mxu1 %v2589_v8  ;;  %v2039_v59 = vld [vmem:[%s2752_s29 + $0x10] sm:$0xf0]  ;;  %v2547_v61 = vld [vmem:[%s2752_s29 + $0x4c] sm:$0xf]  ;;  %v2079_v62 = vld [vmem:[%s2752_s29 + $0x58] sm:$0xf0]  ;;  %v2070_v63 = vor.u32 %v2548_v57, %v2069_v56 }
  0x20   : > { %2666 = vmatpush.bf16.msra.mxu2 %v2589_v8  ;;  %1031 = vmatpush.bf16.msra.mxu3 %v2613_v9  ;;  %v2042_v0 = vor.u32 %v2538_v58, %v2039_v59  ;;  %v2082_v1 = vor.u32 %v2547_v61, %v2079_v62  ;;  %v2061_v2 = vld [vmem:[%s2752_s29 + $0x28] sm:$0xf]  ;;  %v2545_v3 = vld [vmem:[%s2752_s29 + $0x34] sm:$0xf0]  ;;  %v2085_v4 = vld [vmem:[%s2752_s29 + $0x60] sm:$0xf] }
  0x21   : > { %v2552_v5 = vld [vmem:[%s2752_s29 + $0x6c] sm:$0xf0]  ;;  %v2542_v6 = vld [vmem:[%s2752_s29 + $0x24] sm:$0xf]  ;;  %v2055_v7 = vld [vmem:[%s2752_s29 + $0x30] sm:$0xf0]  ;;  %v2062_v8 = vor.u32 %v2545_v3, %v2061_v2 }
  0x22   : > { %v2551_v9 = vld [vmem:[%s2752_s29 + $0x6c] sm:$0xf]  ;;  %v2549_v16 = vld [vmem:[%s2752_s29 + $0x54] sm:$0xf0]  ;;  %v2101_v17 = vld [vmem:[%s2752_s29 + $0x80] sm:$0xf] }
  0x23   : > { %825 = vmatpush.bf16.msra.mxu0 %v2588_v10  ;;  %2667 = vmatpush.bf16.msra.mxu1 %v2588_v10  ;;  %v2556_v18 = vld [vmem:[%s2752_s29 + $0x8c] sm:$0xf0]  ;;  %v2546_v19 = vld [vmem:[%s2752_s29 + $0x44] sm:$0xf]  ;;  %v2555_v22 = vld [vmem:[%s2752_s29 + $0x8c] sm:$0xf] }
  0x24   : > { %2668 = vmatpush.bf16.msra.mxu2 %v2588_v10  ;;  %1032 = vmatpush.bf16.msra.mxu3 %v2612_v11  ;;  %v2095_v10 = vld [vmem:[%s2752_s29 + $0x78] sm:$0xf0]  ;;  %v2086_v11 = vor.u32 %v2552_v5, %v2085_v4  ;;  %v2102_v24 = vor.u32 %v2556_v18, %v2101_v17  ;;  %v2109_v39 = vld [vmem:[%s2752_s29 + $0x88] sm:$0xf]  ;;  %v2557_v40 = vld [vmem:[%s2752_s29 + $0x94] sm:$0xf0] }
  0x25   : > { %v2133_v41 = vld [vmem:[%s2752_s29 + $0xc0] sm:$0xf]  ;;  %v2564_v42 = vld [vmem:[%s2752_s29 + $0xcc] sm:$0xf0]  ;;  %v2119_v56 = vld [vmem:[%s2752_s29 + $0xb0] sm:$0xf0] }
  0x26   : > { %v2149_v53 = vld [vmem:[%s2752_s29 + $0xe0] sm:$0xf]  ;;  %v2568_v54 = vld [vmem:[%s2752_s29 + $0xec] sm:$0xf0]  ;;  %v2567_v58 = vld [vmem:[%s2752_s29 + $0xec] sm:$0xf] }
  0x27   : > { %826 = vmatpush.bf16.msra.mxu0 %v2587_v12  ;;  %2669 = vmatpush.bf16.msra.mxu1 %v2587_v12  ;;  %v2159_v59 = vld [vmem:[%s2752_s29 + $0xf8] sm:$0xf0]  ;;  %v2572_v2 = vld [vmem:[%s2752_s29 + $0x10c] sm:$0xf0]  ;;  %v2562_v3 = vld [vmem:[%s2752_s29 + $0xc4] sm:$0xf] }
  0x28   : > { %2670 = vmatpush.bf16.msra.mxu2 %v2587_v12  ;;  %1033 = vmatpush.bf16.msra.mxu3 %v2611_v13  ;;  %v2058_v12 = vor.u32 %v2542_v6, %v2055_v7  ;;  %v2098_v13 = vor.u32 %v2551_v9, %v2095_v10  ;;  %v2162_v62 = vor.u32 %v2567_v58, %v2159_v59  ;;  %v2135_v4 = vld [vmem:[%s2752_s29 + $0xd0] sm:$0xf0]  ;;  %v2571_v6 = vld [vmem:[%s2752_s29 + $0x10c] sm:$0xf]  ;;  %v2175_v7 = vld [vmem:[%s2752_s29 + $0x118] sm:$0xf0] }
  0x29   : > { %v2138_v9 = vor.u32 %v2562_v3, %v2135_v4  ;;  %v2157_v18 = vld [vmem:[%s2752_s29 + $0xe8] sm:$0xf]  ;;  %v2223_v3 = vld [vmem:[%s2752_s29 + $0x178] sm:$0xf0] }
  0x2b   : > { %827 = vmatpush.bf16.msra.mxu0 %v2586_v14  ;;  %2671 = vmatpush.bf16.msra.mxu1 %v2586_v14 }
  0x2c   : > { %2672 = vmatpush.bf16.msra.mxu2 %v2586_v14  ;;  %1034 = vmatpush.bf16.msra.mxu3 %v2610_v15  ;;  %v2620_v14 = vld [vmem:[%s3171_s3 + $0x18] sm:$0xff]  ;;  %v2077_v15 = vld [vmem:[%s2752_s29 + $0x48] sm:$0xf] }
  0x2d   : > { %v2078_v21 = vor.u32 %v2549_v16, %v2077_v15  ;;  %v2635_v15 = vld [vmem:[%s3172_s4 + $0x30] sm:$0xff] }
  0x2e   : > { %828 = vmatmul.bf16.vlgmr.msra.gmra.mxu0 %v2038_v26  ;;  %873 = vmatmul.bf16.vlgmr.msra.gmra.mxu1 %v2182_v27  ;;  %v2093_v27 = vld [vmem:[%s2752_s29 + $0x68] sm:$0xf] }
  0x2f   : > { %1224 = vmatpush.bf16.msrb.mxu0 %v2618_v23  ;;  %1035 = vmatmul.bf16.vlgmr.msra.gmra.mxu3 %v2050_v28  ;;  %v2111_v23 = vld [vmem:[%s2752_s29 + $0x98] sm:$0xf0]  ;;  %v2553_v28 = vld [vmem:[%s2752_s29 + $0x74] sm:$0xf0] }
  0x30   : > { %958 = vmatpush.bf16.msrb.mxu2 %v2609_v20  ;;  %889 = vmatpush.bf16.msrb.mxu1 %v2601_v29  ;;  %v2071_v20 = vld [vmem:[%s2752_s29 + $0x50] sm:$0xf0]  ;;  %v2114_v26 = vor.u32 %v2555_v22, %v2111_v23  ;;  %v2117_v29 = vld [vmem:[%s2752_s29 + $0xa0] sm:$0xf] }
  0x31   : > { %883 = vmatmul.bf16.vlgmr.msra.gmra.mxu2 %v2214_v30  ;;  %v2074_v25 = vor.u32 %v2546_v19, %v2071_v20  ;;  %v2560_v30 = vld [vmem:[%s2752_s29 + $0xac] sm:$0xf0]  ;;  %v2569_v19 = vld [vmem:[%s2752_s29 + $0xf4] sm:$0xf0]  ;;  %v2634_v20 = vld [vmem:[%s3172_s4 + $0x28] sm:$0xff] }
  0x32   : > { %v2151_v22 = vld [vmem:[%s2752_s29 + $0xf0] sm:$0xf0]  ;;  %v2158_v23 = vor.u32 %v2569_v19, %v2157_v18 }
  0x34   : > { %959 = vmatpush.bf16.msrb.mxu2 %v2608_v31  ;;  %890 = vmatpush.bf16.msrb.mxu1 %v2600_v32  ;;  %v2550_v31 = vld [vmem:[%s2752_s29 + $0x64] sm:$0xf]  ;;  %v2087_v32 = vld [vmem:[%s2752_s29 + $0x70] sm:$0xf0] }
  0x35   : > { %v2090_v37 = vor.u32 %v2550_v31, %v2087_v32 }
  0x38   : > { %960 = vmatpush.bf16.msrb.mxu2 %v2607_v33  ;;  %891 = vmatpush.bf16.msrb.mxu1 %v2599_v34  ;;  %v2094_v33 = vor.u32 %v2553_v28, %v2093_v27  ;;  %v2559_v34 = vld [vmem:[%s2752_s29 + $0xac] sm:$0xf] }
  0x3c   : > { %961 = vmatpush.bf16.msrb.mxu2 %v2606_v35  ;;  %892 = vmatpush.bf16.msrb.mxu1 %v2598_v36  ;;  %v2127_v35 = vld [vmem:[%s2752_s29 + $0xb8] sm:$0xf0]  ;;  %v2118_v36 = vor.u32 %v2560_v30, %v2117_v29  ;;  %v2621_v29 = vld [vmem:[%s2876_s21] sm:$0xff] }
  0x3d   : > { %v2130_v38 = vor.u32 %v2559_v34, %v2127_v35  ;;  %v2633_v30 = vld [vmem:[%s3172_s4 + $0x20] sm:$0xff]  ;;  %v2632_v34 = vld [vmem:[%s3172_s4 + $0x18] sm:$0xff] }
  0x3e   : > { %833 = vmatmul.bf16.gmra.mxu0 %v2054_v44  ;;  %878 = vmatmul.bf16.gmra.mxu1 %v2198_v45  ;;  %v2103_v44 = vld [vmem:[%s2752_s29 + $0x90] sm:$0xf0]  ;;  %v2110_v45 = vor.u32 %v2557_v40, %v2109_v39  ;;  %v2173_v40 = vld [vmem:[%s2752_s29 + $0x108] sm:$0xf] }
  0x3f   : > { %1040 = vmatmul.bf16.gmra.mxu3 %v2066_v46  ;;  %v2563_v46 = vld [vmem:[%s2752_s29 + $0xcc] sm:$0xf] }
  0x40   : > { %962 = vmatpush.bf16.msrb.mxu2 %v2605_v43  ;;  %893 = vmatpush.bf16.msrb.mxu1 %v2597_v47  ;;  %v2554_v43 = vld [vmem:[%s2752_s29 + $0x84] sm:$0xf]  ;;  %v2143_v47 = vld [vmem:[%s2752_s29 + $0xd8] sm:$0xf0] }
  0x44   : > { %963 = vmatpush.bf16.msrb.mxu2 %v2604_v48  ;;  %894 = vmatpush.bf16.msrb.mxu1 %v2596_v49  ;;  %v2134_v48 = vor.u32 %v2564_v42, %v2133_v41  ;;  %v2106_v49 = vor.u32 %v2554_v43, %v2103_v44  ;;  %v2573_v41 = vld [vmem:[%s2752_s29 + $0x114] sm:$0xf0]  ;;  %v2630_v42 = vld [vmem:[%s3172_s4 + $0x8] sm:$0xff]  ;;  %v2570_v43 = vld [vmem:[%s2752_s29 + $0x104] sm:$0xf] }
  0x45   : > { %v2167_v44 = vld [vmem:[%s2752_s29 + $0x110] sm:$0xf0] }
  0x48   : > { %964 = vmatpush.bf16.msrb.mxu2 %v2603_v50  ;;  %895 = vmatpush.bf16.msrb.mxu1 %v2595_v51  ;;  %v2146_v50 = vor.u32 %v2563_v46, %v2143_v47  ;;  %v2125_v51 = vld [vmem:[%s2752_s29 + $0xa8] sm:$0xf]  ;;  %v2579_v46 = vld [vmem:[%s2752_s29 + $0x14c] sm:$0xf]  ;;  %v2207_v47 = vld [vmem:[%s2752_s29 + $0x158] sm:$0xf0] }
  0x4c   : > { %965 = vmatpush.bf16.msrb.mxu2 %v2602_v52  ;;  %896 = vmatpush.bf16.msrb.mxu1 %v2594_v55  ;;  %v2561_v52 = vld [vmem:[%s2752_s29 + $0xb4] sm:$0xf0]  ;;  %v2558_v55 = vld [vmem:[%s2752_s29 + $0xa4] sm:$0xf] }
  0x4d   : > { %v2126_v57 = vor.u32 %v2561_v52, %v2125_v51  ;;  %v2122_v61 = vor.u32 %v2558_v55, %v2119_v56  ;;  %v2629_v51 = vld [vmem:[%s3172_s4] sm:$0xff]  ;;  %v2619_v55 = vld [vmem:[%s3171_s3 + $0x10] sm:$0xff] }
  0x4e   : > { %838 = vmatmul.bf16.gmra.mxu0 %v2070_v63  ;;  %v2141_v63 = vld [vmem:[%s2752_s29 + $0xc8] sm:$0xf] }
  0x4f   : > { %966 = vmatmul.bf16.vlgmr.msrb.gmra.mxu2 %v2046_v60  ;;  %897 = vmatmul.bf16.vlgmr.msrb.gmra.mxu1 %v2042_v0  ;;  %v2150_v60 = vor.u32 %v2568_v54, %v2149_v53  ;;  %v2565_v0 = vld [vmem:[%s2752_s29 + $0xd4] sm:$0xf0]  ;;  %v2210_v54 = vor.u32 %v2579_v46, %v2207_v47 }
  0x50   : > { %1045 = vmatmul.bf16.gmra.mxu3 %v2082_v1  ;;  %1335 = vmatpush.bf16.msra.mxu1 %v2620_v14  ;;  %v2165_v1 = vld [vmem:[%s2752_s29 + $0x100] sm:$0xf]  ;;  %v2142_v5 = vor.u32 %v2565_v0, %v2141_v63  ;;  %v2574_v63 = vld [vmem:[%s2752_s29 + $0x124] sm:$0xf]  ;;  %v2183_v0 = vld [vmem:[%s2752_s29 + $0x130] sm:$0xf0] }
  0x54   : > { %1336 = vmatpush.bf16.msra.mxu1 %v2619_v55  ;;  %v2640_v55 = vld [vmem:[%s3172_s4 + $0x58] sm:$0xff] }
  0x5e   : > { %843 = vmatmul.bf16.gmra.mxu0 %v2086_v11 }
  0x5f   : > { %971 = vmatmul.bf16.gmra.mxu2 %v2062_v8  ;;  %902 = vmatmul.bf16.gmra.mxu1 %v2058_v12  ;;  %v2166_v8 = vor.u32 %v2572_v2, %v2165_v1  ;;  %v2178_v12 = vor.u32 %v2571_v6, %v2175_v7  ;;  %v2583_v2 = vld [vmem:[%s2752_s29 + $0x16c] sm:$0xf]  ;;  %v2186_v6 = vor.u32 %v2574_v63, %v2183_v0  ;;  %v2623_v7 = vld [vmem:[%s2876_s21 + $0x10] sm:$0xff]  ;;  %v2221_v63 = vld [vmem:[%s2752_s29 + $0x168] sm:$0xf] }
  0x60   : > { %1050 = vmatmul.bf16.gmra.mxu3 %v2098_v13  ;;  %v2636_v13 = vld [vmem:[%s3172_s4 + $0x38] sm:$0xff] }
  0x61   : > { %1599 = vmatpush.bf16.msrb.mxu3 %v2636_v13  ;;  %v2226_v13 = vor.u32 %v2583_v2, %v2223_v3  ;;  %v2585_v0 = vld [vmem:[%s2752_s29 + $0x174] sm:$0xf0]  ;;  %v2582_v3 = vld [vmem:[%s2752_s29 + $0x164] sm:$0xf] }
  0x65   : > { %1600 = vmatpush.bf16.msrb.mxu3 %v2635_v15 }
  0x69   : > { %1601 = vmatpush.bf16.msrb.mxu3 %v2634_v20 }
  0x6d   : > { %1602 = vmatpush.bf16.msrb.mxu3 %v2633_v30 }
  0x6e   : > { %848 = vmatmul.bf16.gmra.mxu0 %v2102_v24  ;;  %v2575_v24 = vld [vmem:[%s2752_s29 + $0x12c] sm:$0xf] }
  0x6f   : > { %976 = vmatmul.bf16.gmra.mxu2 %v2078_v21  ;;  %907 = vmatmul.bf16.gmra.mxu1 %v2074_v25  ;;  %v2566_v21 = vld [vmem:[%s2752_s29 + $0xe4] sm:$0xf]  ;;  %v2191_v25 = vld [vmem:[%s2752_s29 + $0x138] sm:$0xf0] }
  0x70   : > { %1055 = vmatmul.bf16.gmra.mxu3 %v2114_v26  ;;  %v2154_v28 = vor.u32 %v2566_v21, %v2151_v22 }
  0x71   : > { %1603 = vmatpush.bf16.msrb.mxu3 %v2632_v34  ;;  %v2199_v34 = vld [vmem:[%s2752_s29 + $0x150] sm:$0xf0] }
  0x7e   : > { %853 = vmatmul.bf16.gmra.mxu0 %v2118_v36  ;;  %v2631_v36 = vld [vmem:[%s3172_s4 + $0x10] sm:$0xff] }
  0x7f   : > { %981 = vmatmul.bf16.gmra.mxu2 %v2094_v33  ;;  %912 = vmatmul.bf16.gmra.mxu1 %v2090_v37  ;;  %v2194_v33 = vor.u32 %v2575_v24, %v2191_v25  ;;  %v2205_v25 = vld [vmem:[%s2752_s29 + $0x148] sm:$0xf] }
  0x80   : > { %1060 = vmatmul.bf16.gmra.mxu3 %v2130_v38 }
  0x81   : > { %1604 = vmatpush.bf16.msrb.mxu3 %v2631_v36 }
  0x85   : > { %1605 = vmatpush.bf16.msrb.mxu3 %v2630_v42 }
  0x89   : > { %1606 = vmatpush.bf16.msrb.mxu3 %v2629_v51 }
  0x8e   : > { %858 = vmatmul.bf16.gmra.mxu0 %v2134_v48 }
  0x8f   : > { %986 = vmatmul.bf16.gmra.mxu2 %v2110_v45  ;;  %917 = vmatmul.bf16.gmra.mxu1 %v2106_v49  ;;  %v2174_v45 = vor.u32 %v2573_v41, %v2173_v40  ;;  %v2170_v49 = vor.u32 %v2570_v43, %v2167_v44  ;;  %v2642_v41 = vld [vmem:[%s3172_s4 + $0x68] sm:$0xff]  ;;  %v2624_v44 = vld [vmem:[%s2876_s21 + $0x18] sm:$0xff] }
  0x90   : > { %1065 = vmatmul.bf16.gmra.mxu3 %v2146_v50  ;;  %v2622_v50 = vld [vmem:[%s2876_s21 + $0x8] sm:$0xff] }
  0x9e   : > { %863 = vmatmul.bf16.gmra.mxu0 %v2150_v60  ;;  %v2189_v60 = vld [vmem:[%s2752_s29 + $0x128] sm:$0xf] }
  0x9f   : > { %991 = vmatmul.bf16.gmra.mxu2 %v2126_v57  ;;  %922 = vmatmul.bf16.gmra.mxu1 %v2122_v61  ;;  %v2577_v61 = vld [vmem:[%s2752_s29 + $0x134] sm:$0xf0] }
  0xa0   : > { %1070 = vmatmul.bf16.gmra.mxu3 %v2162_v62  ;;  %v2190_v1 = vor.u32 %v2577_v61, %v2189_v60 }
  0xab   : > { %v2850_v10 = vpop.f32.mrf.mxu0  ;;  %v2852_v11 = vpop.f32.mrf.mxu1 }
  0xae   : > { %868 = vmatmul.bf16.gmra.mxu0 %v2166_v8 }
  0xaf   : > { %996 = vmatmul.bf16.gmra.mxu2 %v2142_v5  ;;  %927 = vmatmul.bf16.gmra.mxu1 %v2138_v9 }
  0xb0   : > { %1075 = vmatmul.bf16.gmra.mxu3 %v2178_v12 }
  0xb2   : > { %v2857_v14 = vpop.f32.mrf.mxu3 }
  0xb3   : > { %v2862_v16 = vpop.f32.mrf.mxu0  ;;  %v2864_v17 = vpop.f32.mrf.mxu1 }
  0xb4   : > { %v2882_v27 = vpop.f32.mrf.mxu2 }
  0xba   : > { %v2880_v26 = vpop.f32.mrf.mxu3 }
  0xbb   : > { %v2888_v31 = vpop.f32.mrf.mxu0  ;;  %v2890_v32 = vpop.f32.mrf.mxu1 }
  0xbc   : > { %v2905_v39 = vpop.f32.mrf.mxu2 }
  0xbe   : > { %2391 = vmatmul.msk.bf16.vlgmr.msrb.gmra.mxu0 %vm1192_vm0, %v2621_v29 }
  0xbf   : > { %1001 = vmatmul.bf16.gmra.mxu2 %v2158_v23  ;;  %932 = vmatmul.bf16.gmra.mxu1 %v2154_v28  ;;  %v2581_v28 = vld [vmem:[%s2752_s29 + $0x154] sm:$0xf0] }
  0xc0   : > { %1080 = vmatmul.bf16.gmra.mxu3 %v2194_v33  ;;  %v2578_v33 = vld [vmem:[%s2752_s29 + $0x144] sm:$0xf]  ;;  %v2206_v36 = vor.u32 %v2581_v28, %v2205_v25 }
  0xc1   : > { %v2202_v43 = vor.u32 %v2578_v33, %v2199_v34 }
  0xc2   : > { %v2896_v35 = vpop.f32.mrf.mxu3 }
  0xc3   : > { %v2901_v37 = vpop.f32.mrf.mxu0  ;;  %v2903_v38 = vpop.f32.mrf.mxu1 }
  0xca   : > { %v2916_v48 = vpop.f32.mrf.mxu3 }
  0xcb   : > { %v2922_v52 = vpop.f32.mrf.mxu0 }
  0xcc   : > { %v898_v53 = vpop.f32.mrf.mxu1 }
  0xcd   : > { %v899_v8 = vadd.f32 %v898_v53, %v2850_v10  ;;  %v2644_v10 = vld [vmem:[%s3172_s4 + $0x78] sm:$0xff] }
  0xce   : > { %2392 = vmatmul.msk.bf16.gmra.mxu0 %vm1192_vm0, %v2622_v50  ;;  %1498 = vmatpush.bf16.msra.mxu2 %v2644_v10 }
  0xcf   : > { %1006 = vmatmul.bf16.gmra.mxu2 %v2174_v45  ;;  %937 = vmatmul.bf16.gmra.mxu1 %v2170_v49 }
  0xd0   : > { %1085 = vmatmul.bf16.gmra.mxu3 %v2210_v54 }
  0xd2   : > { %v967_v56 = vpop.f32.mrf.mxu2 }
  0xd3   : > { %v2928_v57 = vpop.f32.mrf.mxu3  ;;  %v2930_v58 = vpop.f32.mrf.mxu0  ;;  %v968_v18 = vadd.f32 %v967_v56, %v899_v8  ;;  %v2638_v8 = vld [vmem:[%s3172_s4 + $0x48] sm:$0xff] }
  0xd4   : > { %v900_v59 = vpop.f32.mrf.mxu1 }
  0xd5   : > { %v901_v4 = vadd.f32 %v900_v59, %v2862_v16  ;;  %v1037_v21 = vadd.f32 %v2857_v14, %v968_v18 }
  0xd7   : > { %v1096_v29 = vpack.c.bf16 %v1037_v21, %v1037_v21 }
  0xd9   : > { %v1535_v45 = vunpack.c.l.b16 %v1096_v29 }
  0xda   : > { %v969_v62 = vpop.f32.mrf.mxu2 }
  0xdb   : > { %v2939_v5 = vpop.f32.mrf.mxu3  ;;  %v2943_v9 = vpop.f32.mrf.mxu0  ;;  %v970_v15 = vadd.f32 %v969_v62, %v901_v4  ;;  %v2215_v4 = vld [vmem:[%s2752_s29 + $0x170] sm:$0xf0] }
  0xdc   : > { %v903_v12 = vpop.f32.mrf.mxu1 }
  0xdd   : > { %v1039_v19 = vadd.f32 %v2880_v26, %v970_v15  ;;  %v2643_v26 = vld [vmem:[%s3172_s4 + $0x70] sm:$0xff]  ;;  %v904_v46 = vadd.f32 %v903_v12, %v2888_v31  ;;  %v2218_v12 = vor.u32 %v2582_v3, %v2215_v4 }
  0xde   : > { %2393 = vmatmul.msk.bf16.gmra.mxu0 %vm1192_vm0, %v2623_v7  ;;  %1499 = vmatpush.bf16.msra.mxu2 %v2643_v26  ;;  %v2627_v3 = vld [vmem:[%s2876_s21 + $0x30] sm:$0xff] }
  0xdf   : > { %1011 = vmatmul.bf16.gmra.mxu2 %v2190_v1  ;;  %942 = vmatmul.bf16.gmra.mxu1 %v2186_v6  ;;  %v1097_v24 = vpack.c.bf16 %v1039_v19, %v1039_v19  ;;  %v2639_v1 = vld [vmem:[%s3172_s4 + $0x50] sm:$0xff]  ;;  %v2222_v6 = vor.u32 %v2585_v0, %v2221_v63 }
  0xe0   : > { %1090 = vmatmul.bf16.gmra.mxu3 %v2226_v13  ;;  %v2625_v13 = vld [vmem:[%s2876_s21 + $0x20] sm:$0xff] }
  0xe1   : > { %v1536_v40 = vunpack.c.l.b16 %v1097_v24 }
  0xe2   : > { %v972_v16 = vpop.f32.mrf.mxu2  ;;  %1500 = vmatpush.bf16.msra.mxu2 %v2642_v41  ;;  %v2626_v41 = vld [vmem:[%s2876_s21 + $0x28] sm:$0xff] }
  0xe3   : > { %v2950_v20 = vpop.f32.mrf.mxu3  ;;  %v2953_v22 = vpop.f32.mrf.mxu0  ;;  %v1543_v50 = vpack.c.b16 %v1536_v40, %v1535_v45  ;;  %v973_v53 = vadd.f32 %v972_v16, %v904_v46 }
  0xe4   : > { %v905_v23 = vpop.f32.mrf.mxu1 }
  0xe5   : > { %v906_v14 = vadd.f32 %v905_v23, %v2901_v37  ;;  %v2641_v37 = vld [vmem:[%s3172_s4 + $0x60] sm:$0xff]  ;;  %v1042_v59 = vadd.f32 %v2896_v35, %v973_v53 }
  0xe6   : > { %1501 = vmatpush.bf16.msra.mxu2 %v2641_v37 }
  0xea   : > { %v974_v30 = vpop.f32.mrf.mxu2  ;;  %1502 = vmatpush.bf16.msra.mxu2 %v2640_v55 }
  0xeb   : > { %v2966_v42 = vpop.f32.mrf.mxu3  ;;  %v2970_v47 = vpop.f32.mrf.mxu0  ;;  %v975_v51 = vadd.f32 %v974_v30, %v906_v14 }
  0xec   : > { %v908_v49 = vpop.f32.mrf.mxu1 }
  0xed   : > { %v1044_v31 = vadd.f32 %v2916_v48, %v975_v51  ;;  %v1098_v48 = vpack.c.bf16 %v1042_v59, %v1042_v59  ;;  %v909_v18 = vadd.f32 %v908_v49, %v2922_v52 }
  0xee   : > { %2394 = vmatmul.msk.bf16.gmra.mxu0 %vm1192_vm0, %v2624_v44  ;;  %1503 = vmatpush.bf16.msra.mxu2 %v2639_v1 }
  0xef   : > { %1016 = vmatmul.bf16.gmra.mxu2 %v2206_v36  ;;  %947 = vmatmul.bf16.gmra.mxu1 %v2202_v43  ;;  %v1099_v62 = vpack.c.bf16 %v1044_v31, %v1044_v31  ;;  %v1537_v15 = vunpack.c.l.b16 %v1098_v48 }
  0xf0   : > { %1607 = vmatmul.bf16.vlgmr.msrb.gmra.mxu3 %v1543_v50 }
  0xf1   : > { %v1538_v7 = vunpack.c.l.b16 %v1099_v62 }
  0xf2   : > { %v977_v54 = vpop.f32.mrf.mxu2  ;;  %1504 = vmatpush.bf16.msra.mxu2 %v2638_v8 }
  0xf3   : > { %v2980_v56 = vpop.f32.mrf.mxu3  ;;  %v851_v60 = vpop.f32.mrf.mxu0  ;;  %v1544_v23 = vpack.c.b16 %v1538_v7, %v1537_v15  ;;  %v978_v24 = vadd.f32 %v977_v54, %v909_v18 }
  0xf4   : > { %v910_v61 = vpop.f32.mrf.mxu1 }
  0xf5   : > { %v911_v35 = vadd.f32 %v910_v61, %v2930_v58  ;;  %v2637_v58 = vld [vmem:[%s3172_s4 + $0x40] sm:$0xff]  ;;  %v1047_v28 = vadd.f32 %v2928_v57, %v978_v24 }
  0xf6   : > { %1505 = vmatpush.bf16.msra.mxu2 %v2637_v58 }
  0xf7   : > { %v1100_v34 = vpack.c.bf16 %v1047_v28, %v1047_v28 }
  0xf9   : > { %v1539_v43 = vunpack.c.l.b16 %v1100_v34 }
  0xfa   : > { %v979_v2 = vpop.f32.mrf.mxu2 }
  0xfb   : > { %v854_v16 = vpop.f32.mrf.mxu0  ;;  %v1058_v10 = vpop.f32.mrf.mxu3  ;;  %v980_v21 = vadd.f32 %v979_v2, %v911_v35 }
  0xfc   : > { %v913_v19 = vpop.f32.mrf.mxu1 }
  0xfd   : > { %v1049_v52 = vadd.f32 %v2939_v5, %v980_v21  ;;  %v914_v44 = vadd.f32 %v913_v19, %v2943_v9 }
  0xfe   : > { %2395 = vmatmul.msk.bf16.gmra.mxu0 %vm1192_vm0, %v2625_v13  ;;  %v2652_v13 = vld [vmem:[%s3172_s4 + $0xb8] sm:$0xff] }
  0xff   : > { %1021 = vmatmul.bf16.gmra.mxu2 %v2222_v6  ;;  %952 = vmatmul.bf16.gmra.mxu1 %v2218_v12  ;;  %v1101_v30 = vpack.c.bf16 %v1049_v52, %v1049_v52 }
 0x100   : > { %1612 = vmatmul.bf16.gmra.mxu3 %v1544_v23  ;;  %1716 = vmatpush.bf16.msrb.mxu2 %v2652_v13 }
 0x101   : > { %v1540_v40 = vunpack.c.l.b16 %v1101_v30 }
 0x102   : > { %v982_v25 = vpop.f32.mrf.mxu2 }
 0x103   : > { %v856_v26 = vpop.f32.mrf.mxu0  ;;  %v1061_v33 = vpop.f32.mrf.mxu3  ;;  %v1545_v5 = vpack.c.b16 %v1540_v40, %v1539_v43  ;;  %v983_v50 = vadd.f32 %v982_v25, %v914_v44  ;;  %v2650_v25 = vld [vmem:[%s3172_s4 + $0xa8] sm:$0xff] }
 0x104   : > { %v915_v29 = vpop.f32.mrf.mxu1 }
 0x105   : > { %v916_v14 = vadd.f32 %v915_v29, %v2953_v22  ;;  %v1052_v54 = vadd.f32 %v2950_v20, %v983_v50  ;;  %v2628_v29 = vld [vmem:[%s2876_s21 + $0x38] sm:$0xff]  ;;  %s2034_s21 = sshll.u32 %s3181_s9, 3 }
 0x106   : > { %s3143_s13 = scalar_lea.vmem %s3173_s5, %s2034_s21 }
 0x107   : > { %v1102_v62 = vpack.c.bf16 %v1052_v54, %v1052_v54 }
 0x109   : > { %v1541_v4 = vunpack.c.l.b16 %v1102_v62 }
 0x10a   : > { %v984_v36 = vpop.f32.mrf.mxu2 }
 0x10b   : > { %v3005_v45 = vpop.f32.mrf.mxu0  ;;  %v985_v49 = vadd.f32 %v984_v36, %v916_v14  ;;  %v1063_v37 = vpop.f32.mrf.mxu3  ;;  %v2649_v36 = vld [vmem:[%s3172_s4 + $0xa0] sm:$0xff] }
 0x10c   : > { %v918_v46 = vpop.f32.mrf.mxu1 }
 0x10d   : > { %v919_v57 = vadd.f32 %v918_v46, %v2970_v47  ;;  %v1054_v22 = vadd.f32 %v2966_v42, %v985_v49  ;;  %v2648_v46 = vld [vmem:[%s3172_s4 + $0x98] sm:$0xff] }
 0x10e   : > { %2396 = vmatmul.msk.bf16.gmra.mxu0 %vm1192_vm0, %v2626_v41 }
 0x10f   : > { %v1103_v59 = vpack.c.bf16 %v1054_v22, %v1054_v22  ;;  %v1122_v22 = vld [vmem:[%s3171_s3 + $0x8] sm:$0x1] }
 0x110   : > { %1617 = vmatmul.bf16.gmra.mxu3 %v1545_v5 }
 0x111   : > { %v1542_v0 = vunpack.c.l.b16 %v1103_v59 }
 0x112   : > { %v987_v51 = vpop.f32.mrf.mxu2 }
 0x113   : > { %v988_v53 = vadd.f32 %v987_v51, %v919_v57  ;;  %v861_v9 = vpop.f32.mrf.mxu0  ;;  %v1066_v48 = vpop.f32.mrf.mxu3  ;;  %v1546_v20 = vpack.c.b16 %v1542_v0, %v1541_v4  ;;  %v2647_v51 = vld [vmem:[%s3172_s4 + $0x90] sm:$0xff] }
 0x114   : > { %v920_v31 = vpop.f32.mrf.mxu1 }
 0x115   : > { %v921_v55 = vadd.f32 %v920_v31, %v851_v60  ;;  %v1057_v61 = vadd.f32 %v2980_v56, %v988_v53  ;;  %v2646_v31 = vld [vmem:[%s3172_s4 + $0x88] sm:$0xff] }
 0x117   : > { %v1104_v1 = vpack.c.bf16 %v1057_v61, %v1057_v61 }
 0x119   : > { %v1434_v35 = vunpack.c.l.b16 %v1104_v1 }
 0x11a   : > { %v989_v47 = vpop.f32.mrf.mxu2 }
 0x11b   : > { %v990_v63 = vadd.f32 %v989_v47, %v921_v55  ;;  %v3013_v6 = vpop.f32.mrf.mxu0 }
 0x11c   : > { %v923_v42 = vpop.f32.mrf.mxu1 }
 0x11d   : > { %v1059_v2 = vadd.f32 %v1058_v10, %v990_v63  ;;  %v924_v60 = vadd.f32 %v923_v42, %v854_v16  ;;  %v1068_v10 = vpop.f32.mrf.mxu3  ;;  %v2651_v16 = vld [vmem:[%s3172_s4 + $0xb0] sm:$0xff]  ;;  %v2645_v63 = vld [vmem:[%s3172_s4 + $0x80] sm:$0xff] }
 0x11e   : > { %2397 = vmatmul.msk.bf16.gmra.mxu0 %vm1192_vm0, %v2627_v3  ;;  %1717 = vmatpush.bf16.msrb.mxu2 %v2651_v16 }
 0x11f   : > { %v1105_v7 = vpack.c.bf16 %v1059_v2, %v1059_v2 }
 0x120   : > { %1622 = vmatmul.bf16.gmra.mxu3 %v1546_v20 }
 0x121   : > { %v1435_v8 = vunpack.c.l.b16 %v1105_v7 }
 0x122   : > { %v992_v56 = vpop.f32.mrf.mxu2  ;;  %1718 = vmatpush.bf16.msrb.mxu2 %v2650_v25 }
 0x123   : > { %v1442_v12 = vpack.c.b16 %v1435_v8, %v1434_v35  ;;  %v993_v15 = vadd.f32 %v992_v56, %v924_v60  ;;  %v3019_v18 = vpop.f32.mrf.mxu0 }
 0x124   : > { %v925_v19 = vpop.f32.mrf.mxu1 }
 0x125   : > { %1506 = vmatmul.bf16.vlgmr.msra.gmra.mxu2 %v1442_v12  ;;  %v926_v21 = vadd.f32 %v925_v19, %v856_v26  ;;  %v1062_v23 = vadd.f32 %v1061_v33, %v993_v15  ;;  %v1071_v40 = vpop.f32.mrf.mxu3 }
 0x126   : > { %1719 = vmatpush.bf16.msrb.mxu2 %v2649_v36 }
 0x127   : > { %v1106_v52 = vpack.c.bf16 %v1062_v23, %v1062_v23 }
 0x129   : > { %v1436_v33 = vunpack.c.l.b16 %v1106_v52 }
 0x12a   : > { %v994_v58 = vpop.f32.mrf.mxu2  ;;  %1720 = vmatpush.bf16.msrb.mxu2 %v2648_v46 }
 0x12b   : > { %v995_v24 = vadd.f32 %v994_v58, %v926_v21  ;;  %v3028_v30 = vpop.f32.mrf.mxu0 }
 0x12c   : > { %v928_v34 = vpop.f32.mrf.mxu1 }
 0x12d   : > { %v1064_v28 = vadd.f32 %v1063_v37, %v995_v24  ;;  %v929_v41 = vadd.f32 %v928_v34, %v3005_v45  ;;  %v1073_v53 = vpop.f32.mrf.mxu3 }
 0x12e   : > { %2398 = vmatmul.msk.bf16.gmra.mxu0 %vm1192_vm0, %v2628_v29  ;;  %1721 = vmatpush.bf16.msrb.mxu2 %v2647_v51 }
 0x12f   : > { %v1107_v26 = vpack.c.bf16 %v1064_v28, %v1064_v28 }
 0x131   : > { %v1437_v14 = vunpack.c.l.b16 %v1107_v26 }
 0x132   : > { %v997_v43 = vpop.f32.mrf.mxu2  ;;  %1722 = vmatpush.bf16.msrb.mxu2 %v2646_v31 }
 0x133   : > { %v1443_v44 = vpack.c.b16 %v1437_v14, %v1436_v33  ;;  %v998_v49 = vadd.f32 %v997_v43, %v929_v41  ;;  %v871_v5 = vpop.f32.mrf.mxu0 }
 0x134   : > { %v930_v57 = vpop.f32.mrf.mxu1 }
 0x135   : > { %1511 = vmatmul.bf16.gmra.mxu2 %v1443_v44  ;;  %v931_v50 = vadd.f32 %v930_v57, %v861_v9  ;;  %v1067_v45 = vadd.f32 %v1066_v48, %v998_v49  ;;  %v1144_v9 = vunpack.c.l.bf16 %v1122_v22  ;;  %v1076_v42 = vpop.f32.mrf.mxu3 }
 0x136   : > { %1723 = vmatpush.bf16.msrb.mxu2 %v2645_v63 }
 0x137   : > { %v1108_v55 = vpack.c.bf16 %v1067_v45, %v1067_v45  ;;  %v3051_v2 = vperm.slane %v1144_v9, 0 }
 0x139   : > { %v1438_v0 = vunpack.c.l.b16 %v1108_v55 }
 0x13a   : > { %v999_v37 = vpop.f32.mrf.mxu2 }
 0x13b   : > { %v1000_v54 = vadd.f32 %v999_v37, %v931_v50  ;;  %v1226_v62 = vpop.f32.mrf.mxu0 }
 0x13c   : > { %v933_v61 = vpop.f32.mrf.mxu1  ;;  %v1227_v7 = vadd.f32 %v1226_v62, %v3051_v2 }
 0x13d   : > { %v1069_v59 = vadd.f32 %v1068_v10, %v1000_v54  ;;  %v934_v48 = vadd.f32 %v933_v61, %v3013_v6  ;;  %v1078_v24 = vpop.f32.mrf.mxu3 }
 0x13e   : > { %v1266_v12 = vmax.f32 %v1227_v7, 0.0 }
 0x13f   : > { %v1109_v47 = vpack.c.bf16 %v1069_v59, %v1069_v59 }
 0x141   : > { %v1439_v1 = vunpack.c.l.b16 %v1109_v47 }
 0x142   : > { %v1002_v3 = vpop.f32.mrf.mxu2 }
 0x143   : > { %v1444_v4 = vpack.c.b16 %v1439_v1, %v1438_v0  ;;  %v1003_v20 = vadd.f32 %v1002_v3, %v934_v48  ;;  %v1228_v8 = vpop.f32.mrf.mxu0 }
 0x144   : > { %v935_v35 = vpop.f32.mrf.mxu1  ;;  %v1229_v56 = vadd.f32 %v1228_v8, %v3051_v2 }
 0x145   : > { %1516 = vmatmul.bf16.gmra.mxu2 %v1444_v4  ;;  %v936_v60 = vadd.f32 %v935_v35, %v3019_v18  ;;  %v1072_v13 = vadd.f32 %v1071_v40, %v1003_v20  ;;  %v1081_v43 = vpop.f32.mrf.mxu3 }
 0x146   : > { %v1267_v15 = vmax.f32 %v1229_v56, 0.0 }
 0x147   : > { %v1110_v21 = vpack.c.bf16 %v1072_v13, %v1072_v13 }
 0x148   : > { %v1282_v19 = vpack.c.bf16 %v1267_v15, %v1266_v12 }
 0x149   : > { %v1440_v52 = vunpack.c.l.b16 %v1110_v21 }
 0x14a   : > { %v1004_v6 = vpop.f32.mrf.mxu2  ;;  %2407 = vmatmul.msk.bf16.vlgmr.msra.gmra.mxu1 %vm1304_vm1, %v1282_v19 }
 0x14b   : > { %v1005_v10 = vadd.f32 %v1004_v6, %v936_v60  ;;  %v1231_v58 = vpop.f32.mrf.mxu0 }
 0x14c   : > { %v938_v23 = vpop.f32.mrf.mxu1  ;;  %v1232_v26 = vadd.f32 %v1231_v58, %v3051_v2 }
 0x14d   : > { %v1074_v16 = vadd.f32 %v1073_v53, %v1005_v10  ;;  %v939_v18 = vadd.f32 %v938_v23, %v3028_v30  ;;  %v1083_v59 = vpop.f32.mrf.mxu3 }
 0x14e   : > { %v1268_v44 = vmax.f32 %v1232_v26, 0.0 }
 0x14f   : > { %v1111_v25 = vpack.c.bf16 %v1074_v16, %v1074_v16 }
 0x151   : > { %v1441_v28 = vunpack.c.l.b16 %v1111_v25 }
 0x152   : > { %v1007_v29 = vpop.f32.mrf.mxu2 }
 0x153   : > { %v1445_v34 = vpack.c.b16 %v1441_v28, %v1440_v52  ;;  %v1008_v36 = vadd.f32 %v1007_v29, %v939_v18  ;;  %v1233_v40 = vpop.f32.mrf.mxu0 }
 0x154   : > { %v940_v33 = vpop.f32.mrf.mxu1  ;;  %v1234_v41 = vadd.f32 %v1233_v40, %v3051_v2 }
 0x155   : > { %1521 = vmatmul.bf16.gmra.mxu2 %v1445_v34  ;;  %v941_v14 = vadd.f32 %v940_v33, %v871_v5  ;;  %v1077_v46 = vadd.f32 %v1076_v42, %v1008_v36 }
 0x156   : > { %v1269_v49 = vmax.f32 %v1234_v41, 0.0 }
 0x157   : > { %v1112_v45 = vpack.c.bf16 %v1077_v46, %v1077_v46 }
 0x158   : > { %v1283_v50 = vpack.c.bf16 %v1269_v49, %v1268_v44 }
 0x159   : > { %v1652_v54 = vunpack.c.l.b16 %v1112_v45 }
 0x15a   : > { %v1009_v57 = vpop.f32.mrf.mxu2  ;;  %2408 = vmatmul.msk.bf16.gmra.mxu1 %vm1304_vm1, %v1283_v50 }
 0x15b   : > { %v1010_v51 = vadd.f32 %v1009_v57, %v941_v14  ;;  %v1236_v22 = vpop.f32.mrf.mxu0 }
 0x15c   : > { %v943_v37 = vpop.f32.mrf.mxu1  ;;  %v1237_v61 = vadd.f32 %v1236_v22, %v3051_v2 }
 0x15d   : > { %v1079_v30 = vadd.f32 %v1078_v24, %v1010_v51  ;;  %v944_v5 = vadd.f32 %v943_v37, %v2852_v11  ;;  %v1086_v11 = vpop.f32.mrf.mxu3 }
 0x15e   : > { %v1270_v48 = vmax.f32 %v1237_v61, 0.0 }
 0x15f   : > { %v1113_v53 = vpack.c.bf16 %v1079_v30, %v1079_v30 }
 0x161   : > { %v1653_v31 = vunpack.c.l.b16 %v1113_v53 }
 0x162   : > { %v1012_v55 = vpop.f32.mrf.mxu2 }
 0x163   : > { %v1660_v9 = vpack.c.b16 %v1653_v31, %v1652_v54  ;;  %v1013_v62 = vadd.f32 %v1012_v55, %v944_v5  ;;  %v1238_v63 = vpop.f32.mrf.mxu0 }
 0x164   : > { %v945_v47 = vpop.f32.mrf.mxu1  ;;  %v1239_v1 = vadd.f32 %v1238_v63, %v3051_v2 }
 0x165   : > { %1724 = vmatmul.bf16.vlgmr.msrb.gmra.mxu2 %v1660_v9  ;;  %v946_v0 = vadd.f32 %v945_v47, %v2864_v17  ;;  %v1082_v3 = vadd.f32 %v1081_v43, %v1013_v62  ;;  %v1088_v25 = vpop.f32.mrf.mxu3 }
 0x166   : > { %v1271_v4 = vmax.f32 %v1239_v1, 0.0 }
 0x167   : > { %v1114_v35 = vpack.c.bf16 %v1082_v3, %v1082_v3 }
 0x168   : > { %v1284_v7 = vpack.c.bf16 %v1271_v4, %v1270_v48 }
 0x169   : > { %v1654_v13 = vunpack.c.l.b16 %v1114_v35 }
 0x16a   : > { %v1014_v42 = vpop.f32.mrf.mxu2  ;;  %2409 = vmatmul.msk.bf16.gmra.mxu1 %vm1304_vm1, %v1284_v7 }
 0x16b   : > { %v1015_v20 = vadd.f32 %v1014_v42, %v946_v0  ;;  %v1241_v56 = vpop.f32.mrf.mxu0 }
 0x16c   : > { %v948_v60 = vpop.f32.mrf.mxu1  ;;  %v1242_v10 = vadd.f32 %v1241_v56, %v3051_v2 }
 0x16d   : > { %v1084_v8 = vadd.f32 %v1083_v59, %v1015_v20  ;;  %v949_v17 = vadd.f32 %v948_v60, %v2890_v32  ;;  %v2656_v32 = vld [vmem:[%s3172_s4 + $0xd8] sm:$0xff]  ;;  %v1091_v46 = vpop.f32.mrf.mxu3 }
 0x16e   : > { %v1272_v52 = vmax.f32 %v1242_v10, 0.0  ;;  %1892 = vmatpush.bf16.msra.mxu0 %v2656_v32  ;;  %v2653_v10 = vld [vmem:[%s3172_s4 + $0xc0] sm:$0xff] }
 0x16f   : > { %v1115_v12 = vpack.c.bf16 %v1084_v8, %v1084_v8 }
 0x171   : > { %v1655_v15 = vunpack.c.l.b16 %v1115_v12 }
 0x172   : > { %v1017_v6 = vpop.f32.mrf.mxu2 }
 0x173   : > { %v1661_v19 = vpack.c.b16 %v1655_v15, %v1654_v13  ;;  %v1018_v21 = vadd.f32 %v1017_v6, %v949_v17  ;;  %v1243_v23 = vpop.f32.mrf.mxu0  ;;  %v2654_v15 = vld [vmem:[%s3172_s4 + $0xc8] sm:$0xff] }
 0x174   : > { %v950_v16 = vpop.f32.mrf.mxu1  ;;  %v1244_v24 = vadd.f32 %v1243_v23, %v3051_v2  ;;  %1807 = vmatpush.bf16.msra.mxu3 %v2654_v15 }
 0x175   : > { %1729 = vmatmul.bf16.gmra.mxu2 %v1661_v19  ;;  %v951_v58 = vadd.f32 %v950_v16, %v2903_v38  ;;  %v1087_v28 = vadd.f32 %v1086_v11, %v1018_v21 }
 0x176   : > { %v1273_v18 = vmax.f32 %v1244_v24, 0.0  ;;  %v1127_v24 = vld [vmem:[%s3171_s3 + $0x20] sm:$0x1] }
 0x177   : > { %v1116_v36 = vpack.c.bf16 %v1087_v28, %v1087_v28 }
 0x178   : > { %v1285_v34 = vpack.c.bf16 %v1273_v18, %v1272_v52  ;;  %1808 = vmatpush.bf16.msra.mxu3 %v2653_v10 }
 0x179   : > { %v1656_v41 = vunpack.c.l.b16 %v1116_v36 }
 0x17a   : > { %v1019_v29 = vpop.f32.mrf.mxu2  ;;  %2410 = vmatmul.msk.bf16.gmra.mxu1 %vm1304_vm1, %v1285_v34 }
 0x17b   : > { %v1020_v26 = vadd.f32 %v1019_v29, %v951_v58  ;;  %v1246_v38 = vpop.f32.mrf.mxu0  ;;  %v2655_v58 = vld [vmem:[%s3172_s4 + $0xd0] sm:$0xff] }
 0x17c   : > { %v953_v40 = vpop.f32.mrf.mxu1  ;;  %v1247_v50 = vadd.f32 %v1246_v38, %v3051_v2  ;;  %1893 = vmatpush.bf16.msra.mxu0 %v2655_v58 }
 0x17d   : > { %v1089_v33 = vadd.f32 %v1088_v25, %v1020_v26  ;;  %v954_v44 = vadd.f32 %v953_v40, %v2882_v27  ;;  %v1093_v27 = vpop.f32.mrf.mxu3 }
 0x17e   : > { %v1274_v53 = vmax.f32 %v1247_v50, 0.0 }
 0x17f   : > { %v1117_v14 = vpack.c.bf16 %v1089_v33, %v1089_v33 }
 0x181   : > { %v1657_v43 = vunpack.c.l.b16 %v1117_v14 }
 0x182   : > { %v1022_v49 = vpop.f32.mrf.mxu2 }
 0x183   : > { %v1662_v57 = vpack.c.b16 %v1657_v43, %v1656_v41  ;;  %v1023_v51 = vadd.f32 %v1022_v49, %v954_v44  ;;  %v1248_v30 = vpop.f32.mrf.mxu0 }
 0x184   : > { %v955_v45 = vpop.f32.mrf.mxu1  ;;  %v1249_v22 = vadd.f32 %v1248_v30, %v3051_v2 }
 0x185   : > { %1734 = vmatmul.bf16.gmra.mxu2 %v1662_v57  ;;  %v956_v37 = vadd.f32 %v955_v45, %v2905_v39  ;;  %v1092_v54 = vadd.f32 %v1091_v46, %v1023_v51 }
 0x186   : > { %v1275_v31 = vmax.f32 %v1249_v22, 0.0 }
 0x187   : > { %v1118_v9 = vpack.c.bf16 %v1092_v54, %v1092_v54 }
 0x188   : > { %v1286_v55 = vpack.c.bf16 %v1275_v31, %v1274_v53 }
 0x189   : > { %v1658_v63 = vunpack.c.l.b16 %v1118_v9 }
 0x18a   : > { %v1024_v5 = vpop.f32.mrf.mxu2  ;;  %2411 = vmatmul.msk.bf16.gmra.mxu1 %vm1304_vm1, %v1286_v55 }
 0x18b   : > { %v1025_v59 = vadd.f32 %v1024_v5, %v956_v37  ;;  %v1251_v62 = vpop.f32.mrf.mxu0 }
 0x18c   : > { %v1252_v39 = vadd.f32 %v1251_v62, %v3051_v2 }
 0x18d   : > { %v1094_v61 = vadd.f32 %v1093_v27, %v1025_v59 }
 0x18e   : > { %v1276_v4 = vmax.f32 %v1252_v39, 0.0 }
 0x18f   : > { %v1119_v47 = vpack.c.bf16 %v1094_v61, %v1094_v61 }
 0x191   : > { %v1659_v0 = vunpack.c.l.b16 %v1119_v47 }
 0x193   : > { %v1663_v1 = vpack.c.b16 %v1659_v0, %v1658_v63  ;;  %v1253_v48 = vpop.f32.mrf.mxu0 }
 0x194   : > { %v1254_v3 = vadd.f32 %v1253_v48, %v3051_v2 }
 0x195   : > { %1739 = vmatmul.bf16.gmra.mxu2 %v1663_v1 }
 0x196   : > { %v1277_v42 = vmax.f32 %v1254_v3, 0.0 }
 0x198   : > { %v1287_v7 = vpack.c.bf16 %v1277_v42, %v1276_v4 }
 0x19a   : > { %2412 = vmatmul.msk.bf16.gmra.mxu1 %vm1304_vm1, %v1287_v7 }
 0x19b   : > { %v1256_v20 = vpop.f32.mrf.mxu0 }
 0x19c   : > { %v1257_v11 = vadd.f32 %v1256_v20, %v3051_v2 }
 0x19e   : > { %v1278_v60 = vmax.f32 %v1257_v11, 0.0 }
 0x1a3   : > { %v1258_v35 = vpop.f32.mrf.mxu0 }
 0x1a4   : > { %v1259_v8 = vadd.f32 %v1258_v35, %v3051_v2 }
 0x1a6   : > { %v1279_v56 = vmax.f32 %v1259_v8, 0.0 }
 0x1a8   : > { %v1288_v12 = vpack.c.bf16 %v1279_v56, %v1278_v60 }
 0x1aa   : > { %2413 = vmatmul.msk.bf16.gmra.mxu1 %vm1304_vm1, %v1288_v12 }
 0x1ab   : > { %v1261_v13 = vpop.f32.mrf.mxu0 }
 0x1ac   : > { %v1262_v17 = vadd.f32 %v1261_v13, %v3051_v2 }
 0x1ae   : > { %v1280_v21 = vmax.f32 %v1262_v17, 0.0 }
 0x1b3   : > { %v1263_v6 = vpop.f32.mrf.mxu0 }
 0x1b4   : > { %v1264_v19 = vadd.f32 %v1263_v6, %v3051_v2  ;;  %v1290_v2 = vunpack.c.l.bf16 %v1127_v24 }
 0x1b6   : > { %v1281_v16 = vmax.f32 %v1264_v19, 0.0  ;;  %v3100_v52 = vperm.slane %v1290_v2, 0 }
 0x1b8   : > { %v1289_v23 = vpack.c.bf16 %v1281_v16, %v1280_v21 }
 0x1ba   : > { %2414 = vmatmul.msk.bf16.gmra.mxu1 %vm1304_vm1, %v1289_v23  ;;  %v1507_v23 = vpop.f32.mrf.mxu2 }
 0x1c7   : > { %v1338_v25 = vpop.f32.mrf.mxu1 }
 0x1c8   : > { %v1339_v28 = vadd.f32 %v1338_v25, %v3100_v52  ;;  %v1608_v25 = vpop.f32.mrf.mxu3 }
 0x1ca   : > { %v1378_v29 = vpack.c.bf16 %v1339_v28, %v1339_v28 }
 0x1cc   : > { %v1765_v32 = vunpack.c.l.b16 %v1378_v29  ;;  %v1509_v29 = vpop.f32.mrf.mxu2 }
 0x1cf   : > { %v1340_v18 = vpop.f32.mrf.mxu1 }
 0x1d0   : > { %v1341_v34 = vadd.f32 %v1340_v18, %v3100_v52 }
 0x1d2   : > { %v1379_v26 = vpack.c.bf16 %v1341_v34, %v1341_v34 }
 0x1d4   : > { %v1766_v36 = vunpack.c.l.b16 %v1379_v26  ;;  %v1610_v26 = vpop.f32.mrf.mxu3 }
 0x1d6   : > { %v1773_v33 = vpack.c.b16 %v1766_v36, %v1765_v32 }
 0x1d7   : > { %v1343_v40 = vpop.f32.mrf.mxu1 }
 0x1d8   : > { %2519 = vmatmul.msk.bf16.vlgmr.msra.gmra.mxu3 %vm1304_vm1, %v1773_v33  ;;  %v1344_v38 = vadd.f32 %v1343_v40, %v3100_v52 }
 0x1da   : > { %v1380_v41 = vpack.c.bf16 %v1344_v38, %v1344_v38 }
 0x1dc   : > { %v1767_v46 = vunpack.c.l.b16 %v1380_v41  ;;  %v1512_v41 = vpop.f32.mrf.mxu2 }
 0x1df   : > { %v1345_v14 = vpop.f32.mrf.mxu1 }
 0x1e0   : > { %v1346_v43 = vadd.f32 %v1345_v14, %v3100_v52 }
 0x1e2   : > { %v1381_v44 = vpack.c.bf16 %v1346_v43, %v1346_v43 }
 0x1e4   : > { %v1768_v49 = vunpack.c.l.b16 %v1381_v44  ;;  %v1613_v44 = vpop.f32.mrf.mxu3 }
 0x1e6   : > { %v1774_v57 = vpack.c.b16 %v1768_v49, %v1767_v46  ;;  %v1514_v46 = vpop.f32.mrf.mxu2 }
 0x1e7   : > { %v1348_v50 = vpop.f32.mrf.mxu1 }
 0x1e8   : > { %2520 = vmatmul.msk.bf16.gmra.mxu3 %vm1304_vm1, %v1774_v57  ;;  %v1349_v51 = vadd.f32 %v1348_v50, %v3100_v52 }
 0x1ea   : > { %v1382_v30 = vpack.c.bf16 %v1349_v51, %v1349_v51 }
 0x1ec   : > { %v1769_v53 = vunpack.c.l.b16 %v1382_v30  ;;  %v1615_v49 = vpop.f32.mrf.mxu3 }
 0x1ee   : > { %v1517_v57 = vpop.f32.mrf.mxu2 }
 0x1ef   : > { %v1350_v45 = vpop.f32.mrf.mxu1 }
 0x1f0   : > { %v1351_v37 = vadd.f32 %v1350_v45, %v3100_v52 }
 0x1f2   : > { %v1383_v22 = vpack.c.bf16 %v1351_v37, %v1351_v37 }
 0x1f4   : > { %v1770_v54 = vunpack.c.l.b16 %v1383_v22  ;;  %v1618_v50 = vpop.f32.mrf.mxu3 }
 0x1f6   : > { %v1775_v31 = vpack.c.b16 %v1770_v54, %v1769_v53  ;;  %v1519_v51 = vpop.f32.mrf.mxu2 }
 0x1f7   : > { %v1353_v5 = vpop.f32.mrf.mxu1 }
 0x1f8   : > { %2521 = vmatmul.msk.bf16.gmra.mxu3 %vm1304_vm1, %v1775_v31  ;;  %v1354_v55 = vadd.f32 %v1353_v5, %v3100_v52 }
 0x1fa   : > { %v1384_v27 = vpack.c.bf16 %v1354_v55, %v1354_v55  ;;  %v1923_v55 = vld [vmem:[%s3172_s4 + $0xe0] sm:$0x1] }
 0x1fc   : > { %v1771_v62 = vunpack.c.l.b16 %v1384_v27  ;;  %v1620_v45 = vpop.f32.mrf.mxu3  ;;  %v1924_v27 = vunpack.c.l.bf16 %v1923_v55 }
 0x1fe   : > { %v3126_v30 = vpop.f32.mrf.mxu2 }
 0x1ff   : > { %v1355_v59 = vpop.f32.mrf.mxu1 }
 0x200   : > { %v1356_v9 = vadd.f32 %v1355_v59, %v3100_v52  ;;  %v1609_v59 = vadd.f32 %v1608_v25, %v1507_v23 }
 0x202   : > { %v1385_v61 = vpack.c.bf16 %v1356_v9, %v1356_v9 }
 0x204   : > { %v1772_v47 = vunpack.c.l.b16 %v1385_v61  ;;  %v3128_v37 = vpop.f32.mrf.mxu3 }
 0x206   : > { %v1776_v63 = vpack.c.b16 %v1772_v47, %v1771_v62  ;;  %v3138_v62 = vperm.slane %v1924_v27, 0 }
 0x207   : > { %v1358_v0 = vpop.f32.mrf.mxu1 }
 0x208   : > { %2522 = vmatmul.msk.bf16.gmra.mxu3 %vm1304_vm1, %v1776_v63  ;;  %v1359_v1 = vadd.f32 %v1358_v0, %v3100_v52 }
 0x20a   : > { %v1386_v48 = vpack.c.bf16 %v1359_v1, %v1359_v1 }
 0x20c   : > { %v1850_v42 = vunpack.c.l.b16 %v1386_v48  ;;  %v3132_v22 = vpop.f32.mrf.mxu3 }
 0x20f   : > { %v1360_v39 = vpop.f32.mrf.mxu1 }
 0x210   : > { %v1361_v3 = vadd.f32 %v1360_v39, %v3100_v52  ;;  %v1611_v39 = vadd.f32 %v1610_v26, %v1509_v29  ;;  %v1621_v26 = vadd.f32 %v1620_v45, %v1519_v51 }
 0x212   : > { %v1387_v4 = vpack.c.bf16 %v1361_v3, %v1361_v3 }
 0x214   : > { %v1851_v7 = vunpack.c.l.b16 %v1387_v4 }
 0x216   : > { %v1858_v20 = vpack.c.b16 %v1851_v7, %v1850_v42 }
 0x217   : > { %v1363_v11 = vpop.f32.mrf.mxu1 }
 0x218   : > { %2531 = vmatmul.msk.bf16.vlgmr.msra.gmra.mxu0 %vm1304_vm1, %v1858_v20  ;;  %v1364_v35 = vadd.f32 %v1363_v11, %v3100_v52  ;;  %v1614_v11 = vadd.f32 %v1613_v44, %v1512_v41 }
 0x21a   : > { %v1388_v60 = vpack.c.bf16 %v1364_v35, %v1364_v35 }
 0x21c   : > { %v1852_v13 = vunpack.c.l.b16 %v1388_v60 }
 0x21f   : > { %v1365_v8 = vpop.f32.mrf.mxu1 }
 0x220   : > { %v1366_v56 = vadd.f32 %v1365_v8, %v3100_v52 }
 0x222   : > { %v1389_v12 = vpack.c.bf16 %v1366_v56, %v1366_v56 }
 0x224   : > { %v1853_v15 = vunpack.c.l.b16 %v1389_v12 }
 0x226   : > { %v1859_v17 = vpack.c.b16 %v1853_v15, %v1852_v13  ;;  %v1616_v15 = vadd.f32 %v1615_v49, %v1514_v46 }
 0x227   : > { %v1368_v6 = vpop.f32.mrf.mxu1 }
 0x228   : > { %2532 = vmatmul.msk.bf16.gmra.mxu0 %vm1304_vm1, %v1859_v17  ;;  %v1369_v19 = vadd.f32 %v1368_v6, %v3100_v52 }
 0x22a   : > { %v1390_v21 = vpack.c.bf16 %v1369_v19, %v1369_v19 }
 0x22c   : > { %v1854_v24 = vunpack.c.l.b16 %v1390_v21 }
 0x22f   : > { %v1370_v10 = vpop.f32.mrf.mxu1 }
 0x230   : > { %v1371_v16 = vadd.f32 %v1370_v10, %v3100_v52 }
 0x232   : > { %v1391_v58 = vpack.c.bf16 %v1371_v16, %v1371_v16 }
 0x234   : > { %v1855_v2 = vunpack.c.l.b16 %v1391_v58  ;;  %v1619_v58 = vadd.f32 %v1618_v50, %v1517_v57 }
 0x236   : > { %v1860_v28 = vpack.c.b16 %v1855_v2, %v1854_v24 }
 0x237   : > { %v1373_v18 = vpop.f32.mrf.mxu1 }
 0x238   : > { %2533 = vmatmul.msk.bf16.gmra.mxu0 %vm1304_vm1, %v1860_v28  ;;  %v1374_v34 = vadd.f32 %v1373_v18, %v3100_v52 }
 0x23a   : > { %v1392_v36 = vpack.c.bf16 %v1374_v34, %v1374_v34 }
 0x23c   : > { %v1856_v38 = vunpack.c.l.b16 %v1392_v36 }
 0x23f   : > { %v1375_v32 = vpop.f32.mrf.mxu1 }
 0x240   : > { %v1376_v33 = vadd.f32 %v1375_v32, %v3100_v52  ;;  %v3130_v52 = vpop.f32.mrf.mxu2 }
 0x241   : > { %v1626_v45 = vadd.f32 %v3132_v22, %v3130_v52 }
 0x242   : > { %v1393_v40 = vpack.c.bf16 %v1376_v33, %v1376_v33 }
 0x244   : > { %v1857_v14 = vunpack.c.l.b16 %v1393_v40 }
 0x246   : > { %v1861_v43 = vpack.c.b16 %v1857_v14, %v1856_v38 }
 0x248   : > { %2534 = vmatmul.msk.bf16.gmra.mxu0 %vm1304_vm1, %v1861_v43  ;;  %v1725_v53 = vpop.f32.mrf.mxu2  ;;  %v1624_v43 = vadd.f32 %v3128_v37, %v3126_v30 }
 0x249   : > { %v1745_v9 = vadd.f32 %v1725_v53, %v1609_v59 }
 0x250   : > { %v1727_v31 = vpop.f32.mrf.mxu2 }
 0x251   : > { %v1746_v3 = vadd.f32 %v1727_v31, %v1611_v39 }
 0x258   : > { %v1730_v47 = vpop.f32.mrf.mxu2 }
 0x259   : > { %v1747_v60 = vadd.f32 %v1730_v47, %v1614_v11 }
 0x25b   : > { %v1810_v54 = vpop.f32.mrf.mxu3 }
 0x25c   : > { %v1830_v61 = vadd.f32 %v1810_v54, %v1745_v9 }
 0x260   : > { %v1732_v20 = vpop.f32.mrf.mxu2 }
 0x261   : > { %v1748_v19 = vadd.f32 %v1732_v20, %v1616_v15 }
 0x263   : > { %v1812_v5 = vpop.f32.mrf.mxu3 }
 0x264   : > { %v1831_v4 = vadd.f32 %v1812_v5, %v1746_v3 }
 0x268   : > { %v1735_v6 = vpop.f32.mrf.mxu2 }
 0x269   : > { %v1749_v2 = vadd.f32 %v1735_v6, %v1619_v58 }
 0x26b   : > { %v1815_v1 = vpop.f32.mrf.mxu3 }
 0x26c   : > { %v1832_v56 = vadd.f32 %v1815_v1, %v1747_v60 }
 0x270   : > { %v1737_v25 = vpop.f32.mrf.mxu2 }
 0x271   : > { %v1750_v36 = vadd.f32 %v1737_v25, %v1621_v26 }
 0x273   : > { %v1817_v8 = vpop.f32.mrf.mxu3 }
 0x274   : > { %v1833_v21 = vadd.f32 %v1817_v8, %v1748_v19 }
 0x278   : > { %v1740_v40 = vpop.f32.mrf.mxu2 }
 0x279   : > { %v1751_v46 = vadd.f32 %v1740_v40, %v1624_v43 }
 0x27b   : > { %v1820_v10 = vpop.f32.mrf.mxu3 }
 0x27c   : > { %v1834_v28 = vadd.f32 %v1820_v10, %v1749_v2 }
 0x280   : > { %v1742_v51 = vpop.f32.mrf.mxu2 }
 0x281   : > { %v1752_v31 = vadd.f32 %v1742_v51, %v1626_v45 }
 0x283   : > { %v1822_v18 = vpop.f32.mrf.mxu3 }
 0x284   : > { %v1835_v33 = vadd.f32 %v1822_v18, %v1750_v36 }
 0x28b   : > { %v1825_v41 = vpop.f32.mrf.mxu3 }
 0x28c   : > { %v1836_v49 = vadd.f32 %v1825_v41, %v1751_v46 }
 0x293   : > { %v1827_v54 = vpop.f32.mrf.mxu3 }
 0x294   : > { %v1837_v5 = vadd.f32 %v1827_v54, %v1752_v31 }
 0x295   : > { %v1895_v63 = vpop.f32.mrf.mxu0 }
 0x296   : > { %v1915_v0 = vadd.f32 %v1895_v63, %v1830_v61 }
 0x298   : > { %v1926_v48 = vadd.f32 %v3138_v62, %v1915_v0 }
 0x29a   : > { %1934 = vst [vmem:[%s3143_s13] sm:$0xff] %v1926_v48 }
 0x29d   : > { %v1897_v42 = vpop.f32.mrf.mxu0 }
 0x29e   : > { %v1916_v7 = vadd.f32 %v1897_v42, %v1831_v4 }
 0x2a0   : > { %v1927_v35 = vadd.f32 %v3138_v62, %v1916_v7 }
 0x2a2   : > { %1935 = vst [vmem:[%s3143_s13 + $0x8] sm:$0xff] %v1927_v35 }
 0x2a5   : > { %v1900_v12 = vpop.f32.mrf.mxu0 }
 0x2a6   : > { %v1917_v13 = vadd.f32 %v1900_v12, %v1832_v56 }
 0x2a8   : > { %v1928_v17 = vadd.f32 %v3138_v62, %v1917_v13 }
 0x2aa   : > { %1936 = vst [vmem:[%s3143_s13 + $0x10] sm:$0xff] %v1928_v17 }
 0x2ad   : > { %v1902_v16 = vpop.f32.mrf.mxu0 }
 0x2ae   : > { %v1918_v23 = vadd.f32 %v1902_v16, %v1833_v21 }
 0x2b0   : > { %v1929_v24 = vadd.f32 %v3138_v62, %v1918_v23 }
 0x2b2   : > { %1937 = vst [vmem:[%s3143_s13 + $0x18] sm:$0xff] %v1929_v24 }
 0x2b5   : > { %v1905_v29 = vpop.f32.mrf.mxu0 }
 0x2b6   : > { %v1919_v34 = vadd.f32 %v1905_v29, %v1834_v28 }
 0x2b8   : > { %v1930_v32 = vadd.f32 %v3138_v62, %v1919_v34 }
 0x2ba   : > { %1938 = vst [vmem:[%s3143_s13 + $0x20] sm:$0xff] %v1930_v32 }
 0x2bd   : > { %v1907_v38 = vpop.f32.mrf.mxu0 }
 0x2be   : > { %v1920_v14 = vadd.f32 %v1907_v38, %v1835_v33 }
 0x2c0   : > { %v1931_v44 = vadd.f32 %v3138_v62, %v1920_v14 }
 0x2c2   : > { %1939 = vst [vmem:[%s3143_s13 + $0x28] sm:$0xff] %v1931_v44 }
 0x2c5   : > { %v1910_v57 = vpop.f32.mrf.mxu0 }
 0x2c6   : > { %v1921_v50 = vadd.f32 %v1910_v57, %v1836_v49 }
 0x2c8   : > { %v1932_v53 = vadd.f32 %v3138_v62, %v1921_v50 }
 0x2ca   : > { %1940 = vst [vmem:[%s3143_s13 + $0x30] sm:$0xff] %v1932_v53 }
 0x2cd   : > { %v1912_v55 = vpop.f32.mrf.mxu0 }
 0x2ce   : > { %v1922_v30 = vadd.f32 %v1912_v55, %v1837_v5 }
 0x2d0   : > { %v1933_v37 = vadd.f32 %v3138_v62, %v1922_v30 }
 0x2d2   : > { %1941 = vst [vmem:[%s3143_s13 + $0x38] sm:$0xff] %v1933_v37 }
 0x2d3 PF: > { %s15_s18 = sadd.s32 1, %s2687_s18  }
 0x2d4   : > { %p12_p7 = scmp.ge.s32.totalorder %s15_s18, 6  }
 0x2d6   :  { %14 = sbr.rel (!%p12_p7) target bundleno = 1 (0x1), region = 76 }

</bundles_post_ra>
